<compile_context>
chip_gen: v7x
topology: tpu7x:2x2x1
jax: 0.10.0
libtpu: 0.0.40
codegen_flags: <defaults>
</compile_context>

<pallas_src>
import functools

import jax
import jax.numpy as jnp
from jax import lax
from jax.experimental import pallas as pl
from jax.experimental.pallas import tpu as pltpu


def _round_up(a, b):
    return (a + b - 1) // b * b


def _row_stride(W):
    """Row stride S for the flattened layout.

    Preference order:
      1) smallest multiple of 128 that is >= W+1 (lane-aligned tap offsets AND
         a zero separator lane) when the lane waste is small,
      2) S == W when W is already a multiple of 128 (keep alignment, use the
         border-mask path),
      3) S == W+1 otherwise (zero separator only; alignment not worth the
         waste at small/awkward W).
    """
    ru = _round_up(W + 1, 128)
    if ru - W <= max(W // 8, 2):
        return ru
    if W % 128 == 0:
        return W
    return W + 1


def _wgan_unet_up_kernel(x1_ref, x2_ref, m1_ref, m2_ref, w_ref,
                         gamma_ref, beta_ref, aux_ref,
                         out_ref, umask_ref, xcol_ref, *,
                         H, S, C1, C2, KH, KW,
                         slide_winsize, ln_n, last_layer, masked_border,
                         ln_eps=1e-5, leaky_slope=0.2):
    """Per-batch-element partial conv + activation, lane-dense (Cout, H*S) layout.

    x1_ref/x2_ref : (1, C1, Lin) / (1, C2, Lin)  f32 row-strided flat features
                    (upsampled x and skip_input), Lin = H*S + 2*S + 2
    m1_ref/m2_ref : same layout, bf16 masks (0/1 exact)
    w_ref         : (Cout, KH*KW*(C1+C2)) bf16, tap-major / channel-minor
    gamma_ref     : (Cout, H*S) f32  (or (1,1) dummy when last_layer)
    beta_ref      : (Cout, H*S) f32  (or (1,1) dummy when last_layer)
    aux_ref       : masked_border -> (2, H*S) [left_ok, right_ok]
                    else (not last_layer) -> (1, H*S) valid-lane mask
                    else -> (1,1) dummy
    out_ref       : (1, Cout, H*S)
    umask_ref     : (1, 1, H*S)   single-channel update mask
    xcol_ref      : (KH*KW*(C1+C2), H*S) bf16 VMEM scratch (im2col slab)
    """
    L = H * S
    Cin = C1 + C2

    # Masks arrive as bf16 (HBM/DMA halved); lift to f32 once for the VPU path
    # (v5e has no native bf16 VPU).
    m1 = m1_ref[0].astype(jnp.float32)
    m2 = m2_ref[0].astype(jnp.float32)
    xm1 = x1_ref[0] * m1                               # partial conv: mask input
    xm2 = x2_ref[0] * m2

    # One cross-sublane channel reduction of the mask, hoisted out of the taps.
    mc = (jnp.sum(m1, axis=0, keepdims=True) +
          jnp.sum(m2, axis=0, keepdims=True))          # (1, Lin)

    if masked_border:                                   # S == W: no separator
        left_ok = aux_ref[0:1, :]
        right_ok = aux_ref[1:2, :]

    msum = jnp.zeros((1, L), jnp.float32)
    for kh in range(KH):
        for kw in range(KW):
            t = kh * KW + kw
            off = kh * S + kw                           # fixed lane offset of this tap
            xs1 = xm1[:, off:off + L]
            xs2 = xm2[:, off:off + L]
            ms = mc[:, off:off + L]
            if masked_border and kw != 1:
                ok = left_ok if kw == 0 else right_ok
                xs1 = xs1 * ok
                xs2 = xs2 * ok
                ms = ms * ok
            # Write the two channel groups of this tap straight into the
            # bf16 im2col scratch (no concatenate, no second full-size copy).
            xcol_ref[t * Cin:t * Cin + C1, :] = xs1.astype(jnp.bfloat16)
            xcol_ref[t * Cin + C1:(t + 1) * Cin, :] = xs2.astype(jnp.bfloat16)
            msum = msum + ms

    # Single MXU contraction, K = KH*KW*Cin, bf16 operands, f32 accumulation.
    acc = jnp.dot(w_ref[...], xcol_ref[...],
                  preferred_element_type=jnp.float32)   # (Cout, L)

    mask_ratio = slide_winsize * pl.reciprocal(msum + 1e-8, approx=False)
    update_mask = jnp.clip(msum, 0.0, 1.0)
    out = acc * (mask_ratio * update_mask)              # bias=None -> raw * ratio

    if last_layer:
        out = jnp.tanh(out)
    else:
        # Fused one-pass LayerNorm statistics over the valid (C, H, W) block.
        ov = out if masked_border else out * aux_ref[...]   # zero separator lanes
        s = jnp.sum(ov)
        ss = jnp.sum(ov * ov)
        mean = s / ln_n
        var = ss / ln_n - mean * mean
        inv = lax.rsqrt(var + ln_eps)
        out = (out - mean) * inv * gamma_ref[...] + beta_ref[...]
        out = jnp.where(out > 0, out, leaky_slope * out)

    out_ref[0] = out
    umask_ref[0] = update_mask


def wgan_unet_up(x, skip_input, mask1, mask2, weight, gamma, beta,
                 last_layer=False):
    """Wrapper.  Inputs/outputs are NCHW (PyTorch convention), float32.

    x, mask1          : (N, C1, H/2, W/2)
    skip_input, mask2 : (N, C2, H, W)
    weight            : (Cout, C1+C2, 3, 3)   (OIHW)
    gamma, beta       : (Cout, H, W)          (LayerNorm([C, H, W]))
    returns           : out (N, Cout, H, W), update_mask (N, Cout, H, W)
    """
    # 2x nearest upsample stays in plain JAX (TODO(synk) above); the channel
    # concat now happens INSIDE the kernel, so it is never materialized in HBM.
    x_up = jnp.repeat(jnp.repeat(x, 2, axis=2), 2, axis=3)
    m_up = jnp.repeat(jnp.repeat(mask1, 2, axis=2), 2, axis=3)

    N, C2, H, W = skip_input.shape
    C1 = x_up.shape[1]
    Cout, Cin_w, KH, KW = weight.shape
    Cin_true = C1 + C2
    assert Cin_w == Cin_true and (KH, KW) == (3, 3), "module uses a 3x3 conv, pad=1"

    S = _row_stride(W)                  # row stride of the flattened layout
    masked_border = (S == W)            # no separator lane -> use border masks
    L = H * S
    Lin = L + 2 * S + 2                 # 1 pad row top/bottom + 1 lane each end

    # Sublane-friendly padded channel counts (v5e: Cout multiple of 8).
    C1p, C2p = _round_up(C1, 8), _round_up(C2, 8)
    Cinp = C1p + C2p
    Coutp = _round_up(Cout, 8)

    def prep(a, cpad):
        """(N, C, H, W) -> (N, cpad, Lin) row-strided, zero-padded flat layout."""
        a = jnp.pad(a, ((0, 0), (0, cpad - a.shape[1]), (0, 0), (0, S - W)))
        return jnp.pad(a.reshape(N, cpad, L), ((0, 0), (0, 0), (S + 1, S + 1)))

    x1 = prep(x_up, C1p)                                        # f32
    x2 = prep(skip_input, C2p)
    m1 = prep(m_up.astype(jnp.bfloat16), C1p)                   # bf16 masks
    m2 = prep(mask2.astype(jnp.bfloat16), C2p)

    # weight[co, ci, kh, kw] -> w_mat[co, (kh*KW+kw)*Cinp + ci'], with the two
    # channel groups (x_up, skip) interleaved exactly like the scratch rows.
    w1 = jnp.pad(weight[:, :C1], ((0, Coutp - Cout), (0, C1p - C1), (0, 0), (0, 0)))
    w2 = jnp.pad(weight[:, C1:], ((0, Coutp - Cout), (0, C2p - C2), (0, 0), (0, 0)))
    w_cat = jnp.concatenate([w1, w2], axis=1)                   # (Coutp, Cinp, 3, 3)
    w_mat = jnp.transpose(w_cat, (0, 2, 3, 1)).reshape(Coutp, KH * KW * Cinp)
    w_mat = w_mat.astype(jnp.bfloat16)                          # bf16 MXU operand

    # gamma / beta / aux: dummies when unused (no dead HBM reads in Tanh path).
    if last_layer:
        gamma_f = jnp.zeros((1, 1), jnp.float32)
        beta_f = jnp.zeros((1, 1), jnp.float32)
        gb_spec = pl.BlockSpec((1, 1), lambda n: (0, 0))
    else:
        gpad = ((0, Coutp - Cout), (0, 0), (0, S - W))
        gamma_f = jnp.pad(gamma, gpad).reshape(Coutp, L)
        beta_f = jnp.pad(beta, gpad).reshape(Coutp, L)
        gb_spec = pl.BlockSpec((Coutp, L), lambda n: (0, 0))

    if masked_border:
        col = jnp.arange(L, dtype=jnp.int32) % S
        aux = jnp.stack([(col != 0), (col != W - 1)]).astype(jnp.float32)  # (2, L)
        aux_spec = pl.BlockSpec((2, L), lambda n: (0, 0))
    elif not last_layer:
        lane = jnp.arange(L, dtype=jnp.int32) % S
        aux = (lane < W).astype(jnp.float32).reshape(1, L)                 # valid lanes
        aux_spec = pl.BlockSpec((1, L), lambda n: (0, 0))
    else:
        aux = jnp.zeros((1, 1), jnp.float32)
        aux_spec = pl.BlockSpec((1, 1), lambda n: (0, 0))

    kernel = functools.partial(
        _wgan_unet_up_kernel, H=H, S=S, C1=C1p, C2=C2p, KH=KH, KW=KW,
        slide_winsize=float(Cin_true * KH * KW),
        ln_n=float(Cout * H * W),
        last_layer=last_layer, masked_border=masked_border)

    out_f, um_f = pl.pallas_call(
        kernel,
        out_shape=(jax.ShapeDtypeStruct((N, Coutp, L), jnp.float32),
                   jax.ShapeDtypeStruct((N, 1, L), jnp.float32)),
        grid_spec=pltpu.PrefetchScalarGridSpec(
            num_scalar_prefetch=0,
            grid=(N,),
            in_specs=[
                pl.BlockSpec((1, C1p, Lin), lambda n: (n, 0, 0)),
                pl.BlockSpec((1, C2p, Lin), lambda n: (n, 0, 0)),
                pl.BlockSpec((1, C1p, Lin), lambda n: (n, 0, 0)),
                pl.BlockSpec((1, C2p, Lin), lambda n: (n, 0, 0)),
                pl.BlockSpec((Coutp, KH * KW * Cinp), lambda n: (0, 0)),
                gb_spec,
                gb_spec,
                aux_spec,
            ],
            out_specs=[
                pl.BlockSpec((1, Coutp, L), lambda n: (n, 0, 0)),
                pl.BlockSpec((1, 1, L), lambda n: (n, 0, 0)),
            ],
            scratch_shapes=[pltpu.VMEM((KH * KW * Cinp, L), jnp.bfloat16)],
        ),
        compiler_params=pltpu.CompilerParams(
            dimension_semantics=("parallel",),
            # 64 MiB: large enough for bigger whole-image blocks on v5e/v6e,
            # and still <= v7x physical VMEM.
            vmem_limit_bytes=64 * 1024 * 1024),
    )(x1, x2, m1, m2, w_mat, gamma_f, beta_f, aux)

    out = out_f.reshape(N, Coutp, H, S)[:, :Cout, :, :W]
    um1 = um_f.reshape(N, 1, H, S)[:, :, :, :W]
    # The kernel emits a single-channel update mask (Cout copies are identical);
    # broadcast kept only to preserve the module's (N, Cout, H, W) return shape.
    umask = jnp.broadcast_to(um1, (N, Cout, H, W))
    return out, umask


def _reference(x, skip_input, mask1, mask2, weight, gamma, beta,
               last_layer=False):
    """Pure-JAX reference implementing the same PyTorch forward (NCHW, f32)."""
    x_up = jnp.repeat(jnp.repeat(x, 2, axis=2), 2, axis=3)
    m_up = jnp.repeat(jnp.repeat(mask1, 2, axis=2), 2, axis=3)
    feat = jnp.concatenate([x_up, skip_input], axis=1)
    mask = jnp.concatenate([m_up, mask2], axis=1)
    Cout, Cin, KH, KW = weight.shape
    dn = lax.conv_dimension_numbers(feat.shape, weight.shape,
                                    ('NCHW', 'OIHW', 'NCHW'))
    raw = lax.conv_general_dilated(feat * mask, weight, (1, 1),
                                   ((1, 1), (1, 1)), dimension_numbers=dn)
    um = lax.conv_general_dilated(mask, jnp.ones_like(weight), (1, 1),
                                  ((1, 1), (1, 1)), dimension_numbers=dn)
    ratio = (Cin * KH * KW) / (um + 1e-8)
    umc = jnp.clip(um, 0.0, 1.0)
    out = raw * (ratio * umc)
    if last_layer:
        out = jnp.tanh(out)
    else:
        mean = jnp.mean(out, axis=(1, 2, 3), keepdims=True)
        var = jnp.mean((out - mean) ** 2, axis=(1, 2, 3), keepdims=True)
        out = (out - mean) / jnp.sqrt(var + 1e-5)
        out = out * gamma[None] + beta[None]
        out = jnp.where(out > 0, out, 0.2 * out)
    return out, umc


if __name__ == "__main__":
    key = jax.random.PRNGKey(0)
    k1, k2, k3, k4, k5, k6, k7 = jax.random.split(key, 7)

    # in_size = C1 + C2 = 16, out_size = 4 -> padded to 8-sublane Cout inside.
    N, C1, C2, H, W = 2, 8, 8, 16, 16
    Cout, K = 8, 3

    x = jax.random.normal(k1, (N, C1, H // 2, W // 2), jnp.float32)
    skip = jax.random.normal(k2, (N, C2, H, W), jnp.float32)
    mask1 = (jax.random.uniform(k3, (N, C1, H // 2, W // 2)) > 0.3).astype(jnp.float32)
    mask2 = (jax.random.uniform(k4, (N, C2, H, W)) > 0.3).astype(jnp.float32)

    weight = 0.1 * jax.random.normal(k5, (Cout, C1 + C2, K, K), jnp.float32)
    gamma = 1.0 + 0.1 * jax.random.normal(k6, (Cout, H, W), jnp.float32)
    beta = 0.1 * jax.random.normal(k7, (Cout, H, W), jnp.float32)

    for last_layer in (False, True):
        out, umask = wgan_unet_up(x, skip, mask1, mask2, weight, gamma, beta,
                                  last_layer=last_layer)
        out, umask = jax.block_until_ready(out), jax.block_until_ready(umask)
        ref_out, ref_umask = _reference(x, skip, mask1, mask2, weight, gamma,
                                        beta, last_layer=last_layer)
        assert out.shape == (N, Cout, H, W) and umask.shape == (N, Cout, H, W)
        # bf16 MXU operands -> relative tolerance (per the perf review); the
        # mask / ratio / update-mask path stays exact f32.
        err_ok = jnp.all(jnp.abs(out - ref_out) <= 3e-2 + 3e-2 * jnp.abs(ref_out))
        assert bool(err_ok), (
            f"max abs err {float(jnp.max(jnp.abs(out - ref_out)))}")
        assert float(jnp.max(jnp.abs(umask - ref_umask))) < 1e-5

    print("KERNEL_OK")
</pallas_src>

<mosaic_0001>
module attributes {stable_mosaic.version = 11 : i64} {
  func.func @_wgan_unet_up_kernel(%arg0: i32, %arg1: memref<1x8x308xf32, #tpu.memory_space<vmem>>, %arg2: memref<1x8x308xf32, #tpu.memory_space<vmem>>, %arg3: memref<1x8x308xbf16, #tpu.memory_space<vmem>>, %arg4: memref<1x8x308xbf16, #tpu.memory_space<vmem>>, %arg5: memref<8x144xbf16, #tpu.memory_space<vmem>>, %arg6: memref<8x272xf32, #tpu.memory_space<vmem>>, %arg7: memref<8x272xf32, #tpu.memory_space<vmem>>, %arg8: memref<1x272xf32, #tpu.memory_space<vmem>>, %arg9: memref<1x8x272xf32, #tpu.memory_space<vmem>>, %arg10: memref<1x1x272xf32, #tpu.memory_space<vmem>>, %arg11: memref<144x272xbf16, #tpu.memory_space<vmem>>) attributes {dimension_semantics = [#tpu.dimension_semantics<parallel>], iteration_bounds = array<i64: 2>, scalar_prefetch = 0 : i64, scratch_operands = 1 : i64, tpu.core_type = #tpu.core_type<tc>, window_params = [{transform_indices = @transform_0, window_bounds = array<i64: 1, 8, 308>}, {transform_indices = @transform_1, window_bounds = array<i64: 1, 8, 308>}, {transform_indices = @transform_2, window_bounds = array<i64: 1, 8, 308>}, {transform_indices = @transform_3, window_bounds = array<i64: 1, 8, 308>}, {pipeline_mode = #tpu.pipeline_mode<synchronous>, transform_indices = @transform_4, window_bounds = array<i64: 8, 144>}, {pipeline_mode = #tpu.pipeline_mode<synchronous>, transform_indices = @transform_5, window_bounds = array<i64: 8, 272>}, {pipeline_mode = #tpu.pipeline_mode<synchronous>, transform_indices = @transform_6, window_bounds = array<i64: 8, 272>}, {pipeline_mode = #tpu.pipeline_mode<synchronous>, transform_indices = @transform_7, window_bounds = array<i64: 1, 272>}, {transform_indices = @transform_8, window_bounds = array<i64: 1, 8, 272>}, {transform_indices = @transform_9, window_bounds = array<i64: 1, 1, 272>}]} {
    %c0 = arith.constant 0 : index
    %c0_0 = arith.constant 0 : index
    %c0_1 = arith.constant 0 : index
    %0 = vector.load %arg3[%c0, %c0_0, %c0_1] : memref<1x8x308xbf16, #tpu.memory_space<vmem>>, vector<1x8x308xbf16>
    %1 = vector.shape_cast %0 : vector<1x8x308xbf16> to vector<8x308xbf16>
    %2 = arith.extf %1 : vector<8x308xbf16> to vector<8x308xf32>
    %c0_2 = arith.constant 0 : index
    %c0_3 = arith.constant 0 : index
    %c0_4 = arith.constant 0 : index
    %3 = vector.load %arg4[%c0_2, %c0_3, %c0_4] : memref<1x8x308xbf16, #tpu.memory_space<vmem>>, vector<1x8x308xbf16>
    %4 = vector.shape_cast %3 : vector<1x8x308xbf16> to vector<8x308xbf16>
    %5 = arith.extf %4 : vector<8x308xbf16> to vector<8x308xf32>
    %c0_5 = arith.constant 0 : index
    %c0_6 = arith.constant 0 : index
    %c0_7 = arith.constant 0 : index
    %6 = vector.load %arg1[%c0_5, %c0_6, %c0_7] : memref<1x8x308xf32, #tpu.memory_space<vmem>>, vector<1x8x308xf32>
    %7 = vector.shape_cast %6 : vector<1x8x308xf32> to vector<8x308xf32>
    %8 = arith.mulf %7, %2 : vector<8x308xf32>
    %c0_8 = arith.constant 0 : index
    %c0_9 = arith.constant 0 : index
    %c0_10 = arith.constant 0 : index
    %9 = vector.load %arg2[%c0_8, %c0_9, %c0_10] : memref<1x8x308xf32, #tpu.memory_space<vmem>>, vector<1x8x308xf32>
    %10 = vector.shape_cast %9 : vector<1x8x308xf32> to vector<8x308xf32>
    %11 = arith.mulf %10, %5 : vector<8x308xf32>
    %cst = arith.constant dense<0.000000e+00> : vector<308xf32>
    %12 = vector.multi_reduction <add>, %2, %cst [0] : vector<8x308xf32> to vector<308xf32>
    %13 = vector.shape_cast %12 : vector<308xf32> to vector<1x308xf32>
    %cst_11 = arith.constant dense<0.000000e+00> : vector<308xf32>
    %14 = vector.multi_reduction <add>, %5, %cst_11 [0] : vector<8x308xf32> to vector<308xf32>
    %15 = vector.shape_cast %14 : vector<308xf32> to vector<1x308xf32>
    %16 = arith.addf %13, %15 : vector<1x308xf32>
    %cst_12 = arith.constant 0.000000e+00 : f32
    %17 = vector.broadcast %cst_12 : f32 to vector<1x272xf32>
    %18 = vector.extract_strided_slice %8 {offsets = [0, 0], sizes = [8, 272], strides = [1, 1]} : vector<8x308xf32> to vector<8x272xf32>
    %19 = vector.extract_strided_slice %11 {offsets = [0, 0], sizes = [8, 272], strides = [1, 1]} : vector<8x308xf32> to vector<8x272xf32>
    %20 = vector.extract_strided_slice %16 {offsets = [0, 0], sizes = [1, 272], strides = [1, 1]} : vector<1x308xf32> to vector<1x272xf32>
    %21 = arith.truncf %18 : vector<8x272xf32> to vector<8x272xbf16>
    %c0_13 = arith.constant 0 : index
    %c0_14 = arith.constant 0 : index
    %22 = vector.load %arg11[%c0_13, %c0_14] : memref<144x272xbf16, #tpu.memory_space<vmem>>, vector<8x272xbf16>
    tpu.vector_store %arg11[%c0_13, %c0_14], %21 {strides = array<i32>} : memref<144x272xbf16, #tpu.memory_space<vmem>>, vector<8x272xbf16>,
    %23 = arith.truncf %19 : vector<8x272xf32> to vector<8x272xbf16>
    %c8 = arith.constant 8 : index
    %c0_15 = arith.constant 0 : index
    %24 = vector.load %arg11[%c8, %c0_15] : memref<144x272xbf16, #tpu.memory_space<vmem>>, vector<8x272xbf16>
    tpu.vector_store %arg11[%c8, %c0_15], %23 {strides = array<i32>} : memref<144x272xbf16, #tpu.memory_space<vmem>>, vector<8x272xbf16>,
    %25 = arith.addf %17, %20 : vector<1x272xf32>
    %26 = vector.extract_strided_slice %8 {offsets = [0, 1], sizes = [8, 272], strides = [1, 1]} : vector<8x308xf32> to vector<8x272xf32>
    %27 = vector.extract_strided_slice %11 {offsets = [0, 1], sizes = [8, 272], strides = [1, 1]} : vector<8x308xf32> to vector<8x272xf32>
    %28 = vector.extract_strided_slice %16 {offsets = [0, 1], sizes = [1, 272], strides = [1, 1]} : vector<1x308xf32> to vector<1x272xf32>
    %29 = arith.truncf %26 : vector<8x272xf32> to vector<8x272xbf16>
    %c16 = arith.constant 16 : index
    %c0_16 = arith.constant 0 : index
    %30 = vector.load %arg11[%c16, %c0_16] : memref<144x272xbf16, #tpu.memory_space<vmem>>, vector<8x272xbf16>
    tpu.vector_store %arg11[%c16, %c0_16], %29 {strides = array<i32>} : memref<144x272xbf16, #tpu.memory_space<vmem>>, vector<8x272xbf16>,
    %31 = arith.truncf %27 : vector<8x272xf32> to vector<8x272xbf16>
    %c24 = arith.constant 24 : index
    %c0_17 = arith.constant 0 : index
    %32 = vector.load %arg11[%c24, %c0_17] : memref<144x272xbf16, #tpu.memory_space<vmem>>, vector<8x272xbf16>
    tpu.vector_store %arg11[%c24, %c0_17], %31 {strides = array<i32>} : memref<144x272xbf16, #tpu.memory_space<vmem>>, vector<8x272xbf16>,
    %33 = arith.addf %25, %28 : vector<1x272xf32>
    %34 = vector.extract_strided_slice %8 {offsets = [0, 2], sizes = [8, 272], strides = [1, 1]} : vector<8x308xf32> to vector<8x272xf32>
    %35 = vector.extract_strided_slice %11 {offsets = [0, 2], sizes = [8, 272], strides = [1, 1]} : vector<8x308xf32> to vector<8x272xf32>
    %36 = vector.extract_strided_slice %16 {offsets = [0, 2], sizes = [1, 272], strides = [1, 1]} : vector<1x308xf32> to vector<1x272xf32>
    %37 = arith.truncf %34 : vector<8x272xf32> to vector<8x272xbf16>
    %c32 = arith.constant 32 : index
    %c0_18 = arith.constant 0 : index
    %38 = vector.load %arg11[%c32, %c0_18] : memref<144x272xbf16, #tpu.memory_space<vmem>>, vector<8x272xbf16>
    tpu.vector_store %arg11[%c32, %c0_18], %37 {strides = array<i32>} : memref<144x272xbf16, #tpu.memory_space<vmem>>, vector<8x272xbf16>,
    %39 = arith.truncf %35 : vector<8x272xf32> to vector<8x272xbf16>
    %c40 = arith.constant 40 : index
    %c0_19 = arith.constant 0 : index
    %40 = vector.load %arg11[%c40, %c0_19] : memref<144x272xbf16, #tpu.memory_space<vmem>>, vector<8x272xbf16>
    tpu.vector_store %arg11[%c40, %c0_19], %39 {strides = array<i32>} : memref<144x272xbf16, #tpu.memory_space<vmem>>, vector<8x272xbf16>,
    %41 = arith.addf %33, %36 : vector<1x272xf32>
    %42 = vector.extract_strided_slice %8 {offsets = [0, 17], sizes = [8, 272], strides = [1, 1]} : vector<8x308xf32> to vector<8x272xf32>
    %43 = vector.extract_strided_slice %11 {offsets = [0, 17], sizes = [8, 272], strides = [1, 1]} : vector<8x308xf32> to vector<8x272xf32>
    %44 = vector.extract_strided_slice %16 {offsets = [0, 17], sizes = [1, 272], strides = [1, 1]} : vector<1x308xf32> to vector<1x272xf32>
    %45 = arith.truncf %42 : vector<8x272xf32> to vector<8x272xbf16>
    %c48 = arith.constant 48 : index
    %c0_20 = arith.constant 0 : index
    %46 = vector.load %arg11[%c48, %c0_20] : memref<144x272xbf16, #tpu.memory_space<vmem>>, vector<8x272xbf16>
    tpu.vector_store %arg11[%c48, %c0_20], %45 {strides = array<i32>} : memref<144x272xbf16, #tpu.memory_space<vmem>>, vector<8x272xbf16>,
    %47 = arith.truncf %43 : vector<8x272xf32> to vector<8x272xbf16>
    %c56 = arith.constant 56 : index
    %c0_21 = arith.constant 0 : index
    %48 = vector.load %arg11[%c56, %c0_21] : memref<144x272xbf16, #tpu.memory_space<vmem>>, vector<8x272xbf16>
    tpu.vector_store %arg11[%c56, %c0_21], %47 {strides = array<i32>} : memref<144x272xbf16, #tpu.memory_space<vmem>>, vector<8x272xbf16>,
    %49 = arith.addf %41, %44 : vector<1x272xf32>
    %50 = vector.extract_strided_slice %8 {offsets = [0, 18], sizes = [8, 272], strides = [1, 1]} : vector<8x308xf32> to vector<8x272xf32>
    %51 = vector.extract_strided_slice %11 {offsets = [0, 18], sizes = [8, 272], strides = [1, 1]} : vector<8x308xf32> to vector<8x272xf32>
    %52 = vector.extract_strided_slice %16 {offsets = [0, 18], sizes = [1, 272], strides = [1, 1]} : vector<1x308xf32> to vector<1x272xf32>
    %53 = arith.truncf %50 : vector<8x272xf32> to vector<8x272xbf16>
    %c64 = arith.constant 64 : index
    %c0_22 = arith.constant 0 : index
    %54 = vector.load %arg11[%c64, %c0_22] : memref<144x272xbf16, #tpu.memory_space<vmem>>, vector<8x272xbf16>
    tpu.vector_store %arg11[%c64, %c0_22], %53 {strides = array<i32>} : memref<144x272xbf16, #tpu.memory_space<vmem>>, vector<8x272xbf16>,
    %55 = arith.truncf %51 : vector<8x272xf32> to vector<8x272xbf16>
    %c72 = arith.constant 72 : index
    %c0_23 = arith.constant 0 : index
    %56 = vector.load %arg11[%c72, %c0_23] : memref<144x272xbf16, #tpu.memory_space<vmem>>, vector<8x272xbf16>
    tpu.vector_store %arg11[%c72, %c0_23], %55 {strides = array<i32>} : memref<144x272xbf16, #tpu.memory_space<vmem>>, vector<8x272xbf16>,
    %57 = arith.addf %49, %52 : vector<1x272xf32>
    %58 = vector.extract_strided_slice %8 {offsets = [0, 19], sizes = [8, 272], strides = [1, 1]} : vector<8x308xf32> to vector<8x272xf32>
    %59 = vector.extract_strided_slice %11 {offsets = [0, 19], sizes = [8, 272], strides = [1, 1]} : vector<8x308xf32> to vector<8x272xf32>
    %60 = vector.extract_strided_slice %16 {offsets = [0, 19], sizes = [1, 272], strides = [1, 1]} : vector<1x308xf32> to vector<1x272xf32>
    %61 = arith.truncf %58 : vector<8x272xf32> to vector<8x272xbf16>
    %c80 = arith.constant 80 : index
    %c0_24 = arith.constant 0 : index
    %62 = vector.load %arg11[%c80, %c0_24] : memref<144x272xbf16, #tpu.memory_space<vmem>>, vector<8x272xbf16>
    tpu.vector_store %arg11[%c80, %c0_24], %61 {strides = array<i32>} : memref<144x272xbf16, #tpu.memory_space<vmem>>, vector<8x272xbf16>,
    %63 = arith.truncf %59 : vector<8x272xf32> to vector<8x272xbf16>
    %c88 = arith.constant 88 : index
    %c0_25 = arith.constant 0 : index
    %64 = vector.load %arg11[%c88, %c0_25] : memref<144x272xbf16, #tpu.memory_space<vmem>>, vector<8x272xbf16>
    tpu.vector_store %arg11[%c88, %c0_25], %63 {strides = array<i32>} : memref<144x272xbf16, #tpu.memory_space<vmem>>, vector<8x272xbf16>,
    %65 = arith.addf %57, %60 : vector<1x272xf32>
    %66 = vector.extract_strided_slice %8 {offsets = [0, 34], sizes = [8, 272], strides = [1, 1]} : vector<8x308xf32> to vector<8x272xf32>
    %67 = vector.extract_strided_slice %11 {offsets = [0, 34], sizes = [8, 272], strides = [1, 1]} : vector<8x308xf32> to vector<8x272xf32>
    %68 = vector.extract_strided_slice %16 {offsets = [0, 34], sizes = [1, 272], strides = [1, 1]} : vector<1x308xf32> to vector<1x272xf32>
    %69 = arith.truncf %66 : vector<8x272xf32> to vector<8x272xbf16>
    %c96 = arith.constant 96 : index
    %c0_26 = arith.constant 0 : index
    %70 = vector.load %arg11[%c96, %c0_26] : memref<144x272xbf16, #tpu.memory_space<vmem>>, vector<8x272xbf16>
    tpu.vector_store %arg11[%c96, %c0_26], %69 {strides = array<i32>} : memref<144x272xbf16, #tpu.memory_space<vmem>>, vector<8x272xbf16>,
    %71 = arith.truncf %67 : vector<8x272xf32> to vector<8x272xbf16>
    %c104 = arith.constant 104 : index
    %c0_27 = arith.constant 0 : index
    %72 = vector.load %arg11[%c104, %c0_27] : memref<144x272xbf16, #tpu.memory_space<vmem>>, vector<8x272xbf16>
    tpu.vector_store %arg11[%c104, %c0_27], %71 {strides = array<i32>} : memref<144x272xbf16, #tpu.memory_space<vmem>>, vector<8x272xbf16>,
    %73 = arith.addf %65, %68 : vector<1x272xf32>
    %74 = vector.extract_strided_slice %8 {offsets = [0, 35], sizes = [8, 272], strides = [1, 1]} : vector<8x308xf32> to vector<8x272xf32>
    %75 = vector.extract_strided_slice %11 {offsets = [0, 35], sizes = [8, 272], strides = [1, 1]} : vector<8x308xf32> to vector<8x272xf32>
    %76 = vector.extract_strided_slice %16 {offsets = [0, 35], sizes = [1, 272], strides = [1, 1]} : vector<1x308xf32> to vector<1x272xf32>
    %77 = arith.truncf %74 : vector<8x272xf32> to vector<8x272xbf16>
    %c112 = arith.constant 112 : index
    %c0_28 = arith.constant 0 : index
    %78 = vector.load %arg11[%c112, %c0_28] : memref<144x272xbf16, #tpu.memory_space<vmem>>, vector<8x272xbf16>
    tpu.vector_store %arg11[%c112, %c0_28], %77 {strides = array<i32>} : memref<144x272xbf16, #tpu.memory_space<vmem>>, vector<8x272xbf16>,
    %79 = arith.truncf %75 : vector<8x272xf32> to vector<8x272xbf16>
    %c120 = arith.constant 120 : index
    %c0_29 = arith.constant 0 : index
    %80 = vector.load %arg11[%c120, %c0_29] : memref<144x272xbf16, #tpu.memory_space<vmem>>, vector<8x272xbf16>
    tpu.vector_store %arg11[%c120, %c0_29], %79 {strides = array<i32>} : memref<144x272xbf16, #tpu.memory_space<vmem>>, vector<8x272xbf16>,
    %81 = arith.addf %73, %76 : vector<1x272xf32>
    %82 = vector.extract_strided_slice %8 {offsets = [0, 36], sizes = [8, 272], strides = [1, 1]} : vector<8x308xf32> to vector<8x272xf32>
    %83 = vector.extract_strided_slice %11 {offsets = [0, 36], sizes = [8, 272], strides = [1, 1]} : vector<8x308xf32> to vector<8x272xf32>
    %84 = vector.extract_strided_slice %16 {offsets = [0, 36], sizes = [1, 272], strides = [1, 1]} : vector<1x308xf32> to vector<1x272xf32>
    %85 = arith.truncf %82 : vector<8x272xf32> to vector<8x272xbf16>
    %c128 = arith.constant 128 : index
    %c0_30 = arith.constant 0 : index
    %86 = vector.load %arg11[%c128, %c0_30] : memref<144x272xbf16, #tpu.memory_space<vmem>>, vector<8x272xbf16>
    tpu.vector_store %arg11[%c128, %c0_30], %85 {strides = array<i32>} : memref<144x272xbf16, #tpu.memory_space<vmem>>, vector<8x272xbf16>,
    %87 = arith.truncf %83 : vector<8x272xf32> to vector<8x272xbf16>
    %c136 = arith.constant 136 : index
    %c0_31 = arith.constant 0 : index
    %88 = vector.load %arg11[%c136, %c0_31] : memref<144x272xbf16, #tpu.memory_space<vmem>>, vector<8x272xbf16>
    tpu.vector_store %arg11[%c136, %c0_31], %87 {strides = array<i32>} : memref<144x272xbf16, #tpu.memory_space<vmem>>, vector<8x272xbf16>,
    %89 = arith.addf %81, %84 : vector<1x272xf32>
    %c0_32 = arith.constant 0 : index
    %c0_33 = arith.constant 0 : index
    %90 = vector.load %arg5[%c0_32, %c0_33] : memref<8x144xbf16, #tpu.memory_space<vmem>>, vector<8x144xbf16>
    %c0_34 = arith.constant 0 : index
    %c0_35 = arith.constant 0 : index
    %91 = vector.load %arg11[%c0_34, %c0_35] : memref<144x272xbf16, #tpu.memory_space<vmem>>, vector<144x272xbf16>
    %cst_36 = arith.constant dense<0.000000e+00> : vector<8x272xf32>
    %92 = tpu.matmul %90, %91, %cst_36 {dimension_numbers = #tpu.dot_dimension_numbers<[1], [0], [0], [1], [0, 0, 1, 1], [], []>} : vector<8x144xbf16>, vector<144x272xbf16>, vector<8x272xf32> -> vector<8x272xf32>
    %cst_37 = arith.constant 9.99999993E-9 : f32
    %93 = vector.broadcast %cst_37 : f32 to vector<1x272xf32>
    %94 = arith.addf %89, %93 : vector<1x272xf32>
    %95 = tpu.reciprocal %94 : vector<1x272xf32> -> vector<1x272xf32>
    %cst_38 = arith.constant 1.440000e+02 : f32
    %96 = vector.broadcast %cst_38 : f32 to vector<1x272xf32>
    %97 = arith.mulf %96, %95 : vector<1x272xf32>
    %cst_39 = arith.constant 0.000000e+00 : f32
    %cst_40 = arith.constant 1.000000e+00 : f32
    %98 = vector.broadcast %cst_39 : f32 to vector<1x272xf32>
    %99 = arith.maximumf %98, %89 : vector<1x272xf32>
    %100 = vector.broadcast %cst_40 : f32 to vector<1x272xf32>
    %101 = arith.minimumf %100, %99 : vector<1x272xf32>
    %102 = arith.mulf %97, %101 : vector<1x272xf32>
    %103 = vector.broadcast %102 : vector<1x272xf32> to vector<8x272xf32>
    %104 = arith.mulf %92, %103 : vector<8x272xf32>
    %c0_41 = arith.constant 0 : index
    %c0_42 = arith.constant 0 : index
    %105 = vector.load %arg8[%c0_41, %c0_42] : memref<1x272xf32, #tpu.memory_space<vmem>>, vector<1x272xf32>
    %106 = vector.broadcast %105 : vector<1x272xf32> to vector<8x272xf32>
    %107 = arith.mulf %104, %106 : vector<8x272xf32>
    %108 = vector.shape_cast %107 : vector<8x272xf32> to vector<1x8x272xf32>
    %cst_43 = arith.constant dense<0.000000e+00> : vector<1xf32>
    %109 = vector.multi_reduction <add>, %108, %cst_43 [1, 2] : vector<1x8x272xf32> to vector<1xf32>
    %110 = vector.shape_cast %109 : vector<1xf32> to vector<1x1x1xf32>
    %111 = vector.extract %110[0, 0, 0] : f32 from vector<1x1x1xf32>
    %112 = arith.mulf %107, %107 : vector<8x272xf32>
    %113 = vector.shape_cast %112 : vector<8x272xf32> to vector<1x8x272xf32>
    %cst_44 = arith.constant dense<0.000000e+00> : vector<1xf32>
    %114 = vector.multi_reduction <add>, %113, %cst_44 [1, 2] : vector<1x8x272xf32> to vector<1xf32>
    %115 = vector.shape_cast %114 : vector<1xf32> to vector<1x1x1xf32>
    %116 = vector.extract %115[0, 0, 0] : f32 from vector<1x1x1xf32>
    %cst_45 = arith.constant 2.048000e+03 : f32
    %117 = arith.divf %111, %cst_45 : f32
    %cst_46 = arith.constant 2.048000e+03 : f32
    %118 = arith.divf %116, %cst_46 : f32
    %119 = arith.mulf %117, %117 : f32
    %120 = arith.subf %118, %119 : f32
    %cst_47 = arith.constant 9.99999974E-6 : f32
    %121 = arith.addf %120, %cst_47 : f32
    %122 = math.rsqrt %121 : f32
    %123 = vector.broadcast %117 : f32 to vector<8x272xf32>
    %124 = arith.subf %104, %123 : vector<8x272xf32>
    %125 = vector.broadcast %122 : f32 to vector<8x272xf32>
    %126 = arith.mulf %124, %125 : vector<8x272xf32>
    %c0_48 = arith.constant 0 : index
    %c0_49 = arith.constant 0 : index
    %127 = vector.load %arg6[%c0_48, %c0_49] : memref<8x272xf32, #tpu.memory_space<vmem>>, vector<8x272xf32>
    %128 = arith.mulf %126, %127 : vector<8x272xf32>
    %c0_50 = arith.constant 0 : index
    %c0_51 = arith.constant 0 : index
    %129 = vector.load %arg7[%c0_50, %c0_51] : memref<8x272xf32, #tpu.memory_space<vmem>>, vector<8x272xf32>
    %130 = arith.addf %128, %129 : vector<8x272xf32>
    %cst_52 = arith.constant 0.000000e+00 : f32
    %131 = vector.broadcast %cst_52 : f32 to vector<8x272xf32>
    %132 = arith.cmpf ogt, %130, %131 : vector<8x272xf32>
    %cst_53 = arith.constant 2.000000e-01 : f32
    %133 = vector.broadcast %cst_53 : f32 to vector<8x272xf32>
    %134 = arith.mulf %133, %130 : vector<8x272xf32>
    %135 = arith.select %132, %130, %134 : vector<8x272xi1>, vector<8x272xf32>
    %c0_54 = arith.constant 0 : index
    %c0_55 = arith.constant 0 : index
    %c0_56 = arith.constant 0 : index
    %136 = vector.load %arg9[%c0_54, %c0_55, %c0_56] : memref<1x8x272xf32, #tpu.memory_space<vmem>>, vector<1x8x272xf32>
    %137 = vector.shape_cast %136 : vector<1x8x272xf32> to vector<8x272xf32>
    %138 = vector.shape_cast %135 : vector<8x272xf32> to vector<1x8x272xf32>
    tpu.vector_store %arg9[%c0_54, %c0_55, %c0_56], %138 {strides = array<i32>} : memref<1x8x272xf32, #tpu.memory_space<vmem>>, vector<1x8x272xf32>,
    %c0_57 = arith.constant 0 : index
    %c0_58 = arith.constant 0 : index
    %c0_59 = arith.constant 0 : index
    %139 = vector.load %arg10[%c0_57, %c0_58, %c0_59] : memref<1x1x272xf32, #tpu.memory_space<vmem>>, vector<1x1x272xf32>
    %140 = vector.shape_cast %139 : vector<1x1x272xf32> to vector<1x272xf32>
    %141 = vector.shape_cast %101 : vector<1x272xf32> to vector<1x1x272xf32>
    tpu.vector_store %arg10[%c0_57, %c0_58, %c0_59], %141 {strides = array<i32>} : memref<1x1x272xf32, #tpu.memory_space<vmem>>, vector<1x1x272xf32>,
    return
  }
  func.func @transform_0(%arg0: i32) -> (i32, i32, i32) {
    %c0_i32 = arith.constant 0 : i32
    %c0_i32_0 = arith.constant 0 : i32
    %c0_i32_1 = arith.constant 0 : i32
    return %arg0, %c0_i32, %c0_i32_0 : i32, i32, i32
  }
  func.func @transform_1(%arg0: i32) -> (i32, i32, i32) {
    %c0_i32 = arith.constant 0 : i32
    %c0_i32_0 = arith.constant 0 : i32
    %c0_i32_1 = arith.constant 0 : i32
    return %arg0, %c0_i32, %c0_i32_0 : i32, i32, i32
  }
  func.func @transform_2(%arg0: i32) -> (i32, i32, i32) {
    %c0_i32 = arith.constant 0 : i32
    %c0_i32_0 = arith.constant 0 : i32
    %c0_i32_1 = arith.constant 0 : i32
    return %arg0, %c0_i32, %c0_i32_0 : i32, i32, i32
  }
  func.func @transform_3(%arg0: i32) -> (i32, i32, i32) {
    %c0_i32 = arith.constant 0 : i32
    %c0_i32_0 = arith.constant 0 : i32
    %c0_i32_1 = arith.constant 0 : i32
    return %arg0, %c0_i32, %c0_i32_0 : i32, i32, i32
  }
  func.func @transform_4(%arg0: i32) -> (i32, i32) {
    %c0_i32 = arith.constant 0 : i32
    %c0_i32_0 = arith.constant 0 : i32
    %c0_i32_1 = arith.constant 0 : i32
    return %c0_i32, %c0_i32_0 : i32, i32
  }
  func.func @transform_5(%arg0: i32) -> (i32, i32) {
    %c0_i32 = arith.constant 0 : i32
    %c0_i32_0 = arith.constant 0 : i32
    %c0_i32_1 = arith.constant 0 : i32
    return %c0_i32, %c0_i32_0 : i32, i32
  }
  func.func @transform_6(%arg0: i32) -> (i32, i32) {
    %c0_i32 = arith.constant 0 : i32
    %c0_i32_0 = arith.constant 0 : i32
    %c0_i32_1 = arith.constant 0 : i32
    return %c0_i32, %c0_i32_0 : i32, i32
  }
  func.func @transform_7(%arg0: i32) -> (i32, i32) {
    %c0_i32 = arith.constant 0 : i32
    %c0_i32_0 = arith.constant 0 : i32
    %c0_i32_1 = arith.constant 0 : i32
    return %c0_i32, %c0_i32_0 : i32, i32
  }
  func.func @transform_8(%arg0: i32) -> (i32, i32, i32) {
    %c0_i32 = arith.constant 0 : i32
    %c0_i32_0 = arith.constant 0 : i32
    %c0_i32_1 = arith.constant 0 : i32
    return %arg0, %c0_i32, %c0_i32_0 : i32, i32, i32
  }
  func.func @transform_9(%arg0: i32) -> (i32, i32, i32) {
    %c0_i32 = arith.constant 0 : i32
    %c0_i32_0 = arith.constant 0 : i32
    %c0_i32_1 = arith.constant 0 : i32
    return %arg0, %c0_i32, %c0_i32_0 : i32, i32, i32
  }
}

</mosaic_0001>

<bundles_post_ra>
// kernel: tpu_custom_call.1
= control target key start
LH: loop header
LB: loop body
LE: loop exit
PB: predicated region body
PF: predicated region fallthrough
CT: control target
= control target key end

     0   :  { %s2808_s0 = inlined_call_operand.hbm [shape: f32[2,8,308], index: 0, kind: input, shape index: {}]   ;;  %s2809_s1 = inlined_call_operand.hbm [shape: f32[2,8,308], index: 1, kind: input, shape index: {}]   ;;  %s2810_s2 = inlined_call_operand.hbm [shape: bf16[2,8,308], index: 2, kind: input, shape index: {}]   ;;  %s2811_s3 = inlined_call_operand.hbm [shape: bf16[2,8,308], index: 3, kind: input, shape index: {}]   ;;  %s2812_s4 = inlined_call_operand.hbm [shape: bf16[8,144], index: 4, kind: input, shape index: {}]   ;;  %s2813_s5 = inlined_call_operand.hbm [shape: f32[8,272], index: 5, kind: input, shape index: {}]   ;;  %s2814_s6 = inlined_call_operand.hbm [shape: f32[8,272], index: 6, kind: input, shape index: {}]   ;;  %s2815_s7 = inlined_call_operand.hbm [shape: f32[1,272], index: 7, kind: input, shape index: {}]   ;;  %s2816_s8 = inlined_call_operand.hbm [shape: f32[2,8,272], index: 8, kind: output, shape index: {0}]   ;;  %s2817_s9 = inlined_call_operand.hbm [shape: f32[2,1,272], index: 9, kind: output, shape index: {1}]  }
   0x1   :  { %2839 = sst [smem:[#allocation33_spill]] %s2809_s1 }
   0x2   :  { %2840 = sst [smem:[#allocation34_spill]] %s2812_s4 }
   0x3   :  { %2841 = sst [smem:[#allocation35_spill]] %s2813_s5 }
   0x4   :  { %2842 = sst [smem:[#allocation36_spill]] %s2816_s8 }
   0x5   :  { %15 = vsyncpa [#allocation4], 0 }
   0x6   :  { %17 = vsyncpa [#allocation4 + $0x1], 0 }
   0x7   :  { %18 = vsyncpa [#allocation7], 0 }
   0x8   :  { %20 = vsyncpa [#allocation7 + $0x1], 0 }
   0x9   :  { %21 = vsyncpa [#allocation10], 0 }
   0xa   :  { %23 = vsyncpa [#allocation10 + $0x1], 0 }
   0xb   :  { %24 = vsyncpa [#allocation13], 0 }
   0xc   :  { %25 = vsyncpa [#allocation16], 0 }
   0xd   :  { %26 = vsyncpa [#allocation5], 0 }
   0xe   :  { %28 = vsyncpa [#allocation5 + $0x1], 0 }
   0xf   :  { %29 = vsyncpa [#allocation19], 0 }
  0x10   :  { %31 = vsyncpa [#allocation19 + $0x1], 0  ;;  %s2077_s30 = smov 0   ;;  %s2079_s10 = smov 0  }
  0x11   :  { %s2081_s11 = smov 0   ;;  %s2083_s12 = smov 0  }
  0x12 LB: > { %2843 = sst [smem:[#allocation28_spill]] %s1993_s30  ;;  %s2098_s13 = sadd.s32 4294967295, %s2005_s12   ;;  %s2005_s12 = sphi %s2083_s12, %s2884_s12   ;;  %s2001_s11 = sphi %s2081_s11, %s2886_s11   ;;  %s1997_s10 = sphi %s2079_s10, %s2888_s10   ;;  %s1993_s30 = sphi %s2077_s30, %s2887_s30  }
  0x13   : > { %2844 = sst [smem:[#allocation29_spill]] %s2001_s11  ;;  %s1485_s14 = sadd.s32 4294967294, %s2005_s12  }
  0x14   : > { %p57_p0 = scmp.ne.s32.totalorder %s1997_s10, %s1993_s30  ;;  %p2818_p1 = scmp.eq.s32.totalorder %s2098_s13, 0 }
  0x15   : > { %p249_p3 = scmp.eq.s32.totalorder %s1485_s14, 1  ;;  %p1486_p5 = scmp.ge.s32.totalorder %s2005_s12, 1 }
  0x16   : > { %p2107_p4 = por %p2818_p1, %p57_p0  ;;  %p282_p7 = scmp.lt.s32.totalorder %s2005_s12, 3 }
  0x17   : > { %p2112_p6 = por %p249_p3, %p57_p0  ;;  %s2007_s18 = smov [#allocation11]  }
  0x18   : > { %s2845_s15 = scalar_select %p2107_p4, 1, 0 }
  0x19   : > { %s2846_s16 = scalar_select %p2112_p6, 1, 0 }
  0x1a   : > { %p2117_p8 = pnand %p1486_p5, %p282_p7  ;;  %s295_s19 = sshll.u32 %s2007_s18, 4  ;;  %s296_s19 = int_to_ptr.vmem [resolvable:$true] %s295_s19 }
  0x1b   : > { %2847 = sst [smem:[#allocation30_spill]] %s2846_s16  ;;  %s2008_s20 = smov [#allocation12]  }
  0x1c   : > { %s2848_s17 = scalar_select %p2117_p8, 1, 0 }
  0x1d   : > { %p1556_p10 = pneg %p2117_p8  ;;  %s306_s21 = sshll.u32 %s2008_s20, 4  ;;  %s2130_s21 = int_to_ptr.vmem [resolvable:$true] %s306_s21 }
  0x1e   : > { %s2133_s23 = sadd.s32 1, %s2005_s12   ;;  %s2851_s4 = sld [smem:[#allocation34_spill]] }
  0x1f   : > { %p2126_p11 = pnand %p1556_p10, %p2818_p1  ;;  %2850 = sst [smem:[#allocation31_spill]] %s2133_s23 }
  0x21   : > { %s2849_s22 = scalar_select %p2126_p11, 1, 0 }
  0x22   : > { %p2145_p13 = pneg %p2126_p11 }
  0x24   : > { %s1655_s27 = scalar_lea.hbm %s2851_s4, 128 }
  0x25   : > { %p1656_p12 = scmp.ne.s32.totalorder %s2851_s4, %s1655_s27  ;;  %p1662_p5 = scmp.lt.u32.totalorder %s1655_s27, %s2851_s4 }
  0x26   : > { %s2852_s14 = scalar_select %p2145_p13, 1, 0 }
  0x27   : > { %p1658_p0 = pnand %p2145_p13, %p1656_p12 }
  0x29   : > { %p1659_p3 = pneg %p1658_p0 }
  0x2b   : > { %p1664_p7 = pnand %p1662_p5, %p1659_p3 }
  0x2d   : > { %1667 = shalt.err (!%p1664_p7)
}
  0x2e   : > { %s1668_s25 = scalar_lea.vmem %s296_s19, 128  ;;  %p1676_p2 = scmp.lt.s32.totalorder %s296_s19, %s296_s19 }
  0x2f   : > { %p1669_p10 = scmp.ne.s32.totalorder %s296_s19, %s1668_s25  ;;  %p1677_p6 = scmp.lt.s32.totalorder %s1668_s25, %s1668_s25 }
  0x31   : > { %p1671_p9 = pnand %p1669_p10, %p2145_p13  ;;  %p1678_p4 = por %p1677_p6, %p1676_p2 }
  0x33   : > { %p1672_p1 = pneg %p1671_p9 }
  0x35   : > { %p1679_p8 = pnand %p1678_p4, %p1672_p1 }
  0x37   : > { %1682 = shalt.err (!%p1679_p8)
}
  0x38   : > { %1559 = dma.hbm_to_vmem [thread:$0]  (!%p2126_p11), %s2851_s4, 128, %s296_s19, [#allocation10]  }
  0x39   : > { %s2853_s5 = sld [smem:[#allocation35_spill]] }
  0x3f   : > { %s1683_s18 = scalar_lea.hbm %s2853_s5, 384 }
  0x40   : > { %p1684_p9 = scmp.ne.s32.totalorder %s2853_s5, %s1683_s18  ;;  %p1690_p1 = scmp.lt.u32.totalorder %s1683_s18, %s2853_s5 }
  0x42   : > { %p1686_p12 = pnand %p1684_p9, %p2145_p13 }
  0x44   : > { %p1687_p2 = pneg %p1686_p12 }
  0x46   : > { %p1692_p4 = pnand %p1690_p1, %p1687_p2 }
  0x48   : > { %1695 = shalt.err (!%p1692_p4)
}
  0x49   : > { %s1696_s19 = scalar_lea.vmem %s2130_s21, 384  ;;  %p1704_p3 = scmp.lt.s32.totalorder %s2130_s21, %s2130_s21 }
  0x4a   : > { %p1697_p6 = scmp.ne.s32.totalorder %s2130_s21, %s1696_s19  ;;  %p1705_p5 = scmp.lt.s32.totalorder %s1696_s19, %s1696_s19 }
  0x4c   : > { %p1699_p8 = pnand %p1697_p6, %p2145_p13  ;;  %p1706_p7 = por %p1705_p5, %p1704_p3 }
  0x4e   : > { %p1700_p0 = pneg %p1699_p8 }
  0x50   : > { %p1707_p10 = pnand %p1706_p7, %p1700_p0 }
  0x52   : > { %1710 = shalt.err (!%p1707_p10)
}
  0x53   : > { %1562 = dma.hbm_to_vmem [thread:$0]  (!%p2126_p11), %s2853_s5, 384, %s2130_s21, [#allocation13]  }
  0x54   : > { %s2854_s26 = ssub.s32 %s2005_s12, %s2133_s23  ;;  %s44_s28 = sadd.s32 1, %s2001_s11 }
  0x55   : > { %p42_p9 = scmp.eq.s32.totalorder %s2854_s26, 0  ;;  %p51_p12 = scmp.ne.s32.totalorder %s2001_s11, %s1997_s10 }
  0x56   : > { %p52_p2 = scmp.eq.s32.totalorder %s2005_s12, 0  ;;  %p2856_p4 = scmp.eq.s32.totalorder %s2098_s13, 1 }
  0x57   : > { %s2192_s27 = scalar_select %p42_p9, %s2001_s11, %s44_s28  }
  0x58   : > { %p53_p1 = por %p52_p2, %p51_p12  ;;  %p2196_p6 = por %p2856_p4, %p51_p12 }
  0x59   : > { %2855 = sst [smem:[#allocation32_spill]] %s2192_s27  ;;  %p1593_p8 = scmp.lt.s32.totalorder %s2005_s12, 2 }
  0x5a   : > { %s2857_s29 = scalar_select %p2196_p6, 1, 0 }
  0x5b   : > { %s2202_s18 = sand.u32 1, %s2001_s11   ;;  %s2825_s20 = sand.u32 1, %s2005_s12  }
  0x5c   : > { %s2823_s21 = smul.u32 24, %s2202_s18  ;;  %p2207_p0 = pnand %p1593_p8, %p53_p1 }
  0x5d   : > { %s2822_s25 = smul.u32 384, %s2005_s12  ;;  %s2859_s1 = sld [smem:[#allocation33_spill]] }
  0x5e   : > { %s2858_s19 = scalar_select %p2207_p0, 1, 0 }
  0x5f   : > { %s362_s28 = scalar_lea.vmem [#allocation6], %s2823_s21  ;;  %s2224_s5 = scalar_lea.sflag [#allocation7], %s2825_s20 }
  0x60   : > { %s370_s4 = sshll.u32 %s362_s28, 4  ;;  %p2230_p5 = pneg %p2207_p0  ;;  %s2220_s4 = int_to_ptr.vmem [resolvable:$true] %s370_s4 }
  0x62   : > { %s2860_s16 = scalar_select %p2230_p5, 1, 0 }
  0x63   : > { %s2216_s26 = scalar_lea.hbm %s2859_s1, %s2822_s25  ;;  %s1716_s28 = scalar_lea.hbm %s2859_s1, 768 }
  0x64   : > { %s1711_s27 = scalar_lea.hbm %s2216_s26, 384  ;;  %p1717_p9 = scmp.lt.u32.totalorder %s2216_s26, %s2859_s1 }
  0x65   : > { %p1712_p3 = scmp.ne.s32.totalorder %s2216_s26, %s1711_s27  ;;  %p1718_p12 = scmp.lt.u32.totalorder %s1716_s28, %s1711_s27 }
  0x66   : > { %p1720_p1 = scmp.lt.u32.totalorder %s1711_s27, %s2216_s26 }
  0x67   : > { %p1714_p7 = pnand %p2230_p5, %p1712_p3  ;;  %p1719_p2 = por %p1718_p12, %p1717_p9 }
  0x69   : > { %p1715_p10 = pneg %p1714_p7  ;;  %p1721_p4 = por %p1720_p1, %p1719_p2 }
  0x6b   : > { %p1722_p8 = pnand %p1721_p4, %p1715_p10 }
  0x6d   : > { %1725 = shalt.err (!%p1722_p8)
}
  0x6e   : > { %s1726_s20 = scalar_lea.vmem %s2220_s4, 384  ;;  %s2009_s25 = smov [#allocation6]  }
  0x6f   : > { %p1727_p3 = scmp.ne.s32.totalorder %s2220_s4, %s1726_s20  ;;  %s1731_s24 = sshll.u32 %s2009_s25, 4  ;;  %s1732_s24 = int_to_ptr.vmem [resolvable:$false] %s1731_s24 }
  0x70   : > { %s1733_s11 = scalar_lea.vmem %s1732_s24, 768  ;;  %p1734_p11 = scmp.lt.s32.totalorder %s2220_s4, %s1732_s24 }
  0x71   : > { %p1729_p7 = pnand %p1727_p3, %p2230_p5  ;;  %p1735_p13 = scmp.lt.s32.totalorder %s1733_s11, %s1726_s20 }
  0x73   : > { %p1730_p6 = pneg %p1729_p7  ;;  %p1736_p9 = por %p1735_p13, %p1734_p11 }
  0x75   : > { %p1737_p12 = pnand %p1736_p9, %p1730_p6 }
  0x77   : > { %1740 = shalt.err (!%p1737_p12)
}
  0x78   : > { %1575 = dma.hbm_to_vmem [thread:$0]  (!%p2207_p0), %s2216_s26, 384, %s2220_s4, %s2224_s5  }
  0x79   : > { %s2010_s27 = smov [#allocation14]   ;;  %s2011_s28 = smov [#allocation15]  }
  0x7a   : > { %s317_s21 = sshll.u32 %s2010_s27, 4  ;;  %s328_s1 = sshll.u32 %s2011_s28, 4  ;;  %s318_s21 = int_to_ptr.vmem [resolvable:$true] %s317_s21  ;;  %s329_s1 = int_to_ptr.vmem [resolvable:$true] %s328_s1 }
  0x7b   : > { %s1741_s24 = scalar_lea.hbm %s2814_s6, 384  ;;  %p2861_p13 = scmp.ne.s32.totalorder %s2852_s14, 0 }
  0x7c   : > { %p1742_p11 = scmp.ne.s32.totalorder %s2814_s6, %s1741_s24  ;;  %p1748_p2 = scmp.lt.u32.totalorder %s1741_s24, %s2814_s6 }
  0x7e   : > { %p1744_p6 = pnand %p1742_p11, %p2861_p13 }
  0x80   : > { %p1745_p10 = pneg %p1744_p6 }
  0x82   : > { %p1750_p1 = pnand %p1748_p2, %p1745_p10 }
  0x84   : > { %1753 = shalt.err (!%p1750_p1)
}
  0x85   : > { %s1754_s4 = scalar_lea.vmem %s318_s21, 384  ;;  %p1762_p7 = scmp.lt.s32.totalorder %s318_s21, %s318_s21 }
  0x86   : > { %p1755_p4 = scmp.ne.s32.totalorder %s318_s21, %s1754_s4  ;;  %p1763_p9 = scmp.lt.s32.totalorder %s1754_s4, %s1754_s4 }
  0x88   : > { %p1757_p8 = pnand %p1755_p4, %p2861_p13  ;;  %p1764_p12 = por %p1763_p9, %p1762_p7 }
  0x8a   : > { %p1758_p3 = pneg %p1757_p8 }
  0x8c   : > { %p1765_p0 = pnand %p1764_p12, %p1758_p3 }
  0x8e   : > { %1768 = shalt.err (!%p1765_p0)
}
  0x8f   : > { %p2862_p11 = scmp.ne.s32.totalorder %s2849_s22, 0  ;;  %s1769_s27 = scalar_lea.hbm %s2815_s7, 48 }
  0x90   : > { %p1770_p6 = scmp.ne.s32.totalorder %s2815_s7, %s1769_s27  ;;  %p1776_p0 = scmp.lt.u32.totalorder %s1769_s27, %s2815_s7 }
  0x91   : > { %1565 = dma.hbm_to_vmem [thread:$0]  (!%p2862_p11), %s2814_s6, 384, %s318_s21, [#allocation13]  }
  0x92   : > { %p1772_p10 = pnand %p1770_p6, %p2861_p13 }
  0x94   : > { %p1773_p2 = pneg %p1772_p10 }
  0x96   : > { %p1778_p1 = pnand %p1776_p0, %p1773_p2 }
  0x98   : > { %1781 = shalt.err (!%p1778_p1)
}
  0x99   : > { %s1782_s11 = scalar_lea.vmem %s329_s1, 48  ;;  %s1789_s21 = scalar_lea.vmem %s329_s1, 64 }
  0x9a   : > { %p1783_p4 = scmp.ne.s32.totalorder %s329_s1, %s1782_s11  ;;  %p1790_p7 = scmp.lt.s32.totalorder %s329_s1, %s329_s1 }
  0x9b   : > { %p1791_p9 = scmp.lt.s32.totalorder %s1789_s21, %s1782_s11 }
  0x9c   : > { %p1785_p8 = pnand %p1783_p4, %p2861_p13 }
  0x9d   : > { %p1792_p12 = por %p1791_p9, %p1790_p7 }
  0x9e   : > { %p1786_p3 = pneg %p1785_p8 }
  0xa0   : > { %p1793_p5 = pnand %p1792_p12, %p1786_p3 }
  0xa2   : > { %1796 = shalt.err (!%p1793_p5)
}
  0xa3   : > { %1568 = dma.hbm_to_vmem [thread:$0]  (!%p2862_p11), %s2815_s7, 48, %s329_s1, [#allocation16]  }
  0xa4   : > { %s2863_s14 = smul.u32 384, %s2005_s12  ;;  %s340_s20 = scalar_lea.sflag [#allocation4], %s2202_s18 }
  0xa5   : > { %s2864_s27 = smul.u32 24, %s2202_s18  ;;  %p2865_p13 = scmp.ne.s32.totalorder %s2860_s16, 0 }
  0xa6   : > { %s2295_s30 = scalar_lea.hbm %s2808_s0, %s2863_s14  ;;  %s1513_s25 = smul.u32 12, %s2202_s18 }
  0xa7   : > { %s343_s22 = scalar_lea.vmem [#allocation3], %s2864_s27  ;;  %s1514_s24 = smul.u32 192, %s2005_s12 }
  0xa8   : > { %s351_s28 = sshll.u32 %s343_s22, 4  ;;  %s1797_s11 = scalar_lea.hbm %s2295_s30, 384  ;;  %s2300_s28 = int_to_ptr.vmem [resolvable:$true] %s351_s28 }
  0xa9   : > { %p1798_p5 = scmp.ne.s32.totalorder %s2295_s30, %s1797_s11  ;;  %s1802_s4 = scalar_lea.hbm %s2808_s0, 768 }
  0xaa   : > { %p1803_p10 = scmp.lt.u32.totalorder %s2295_s30, %s2808_s0  ;;  %p1804_p2 = scmp.lt.u32.totalorder %s1802_s4, %s1797_s11 }
  0xab   : > { %p1800_p11 = pnand %p1798_p5, %p2865_p13  ;;  %p1806_p1 = scmp.lt.u32.totalorder %s1797_s11, %s2295_s30 }
  0xac   : > { %p1805_p0 = por %p1804_p2, %p1803_p10 }
  0xad   : > { %p1801_p6 = pneg %p1800_p11 }
  0xae   : > { %p1807_p4 = por %p1806_p1, %p1805_p0 }
  0xb0   : > { %p1808_p8 = pnand %p1807_p4, %p1801_p6 }
  0xb2   : > { %1811 = shalt.err (!%p1808_p8)
}
  0xb3   : > { %s1812_s26 = scalar_lea.vmem %s2300_s28, 384  ;;  %s2012_s8 = smov [#allocation3]  }
  0xb4   : > { %p1813_p3 = scmp.ne.s32.totalorder %s2300_s28, %s1812_s26  ;;  %s1817_s27 = sshll.u32 %s2012_s8, 4  ;;  %s1818_s27 = int_to_ptr.vmem [resolvable:$false] %s1817_s27 }
  0xb5   : > { %s1819_s22 = scalar_lea.vmem %s1818_s27, 768  ;;  %p1820_p12 = scmp.lt.s32.totalorder %s2300_s28, %s1818_s27 }
  0xb6   : > { %p1815_p7 = pnand %p1813_p3, %p2865_p13  ;;  %p1821_p5 = scmp.lt.s32.totalorder %s1819_s22, %s1812_s26 }
  0xb8   : > { %p1816_p9 = pneg %p1815_p7  ;;  %p1822_p11 = por %p1821_p5, %p1820_p12 }
  0xba   : > { %p1823_p10 = pnand %p1822_p11, %p1816_p9 }
  0xbc   : > { %1826 = shalt.err (!%p1823_p10)
}
  0xbd   : > { %p2866_p6 = scmp.ne.s32.totalorder %s2858_s19, 0  ;;  %s2330_s21 = scalar_lea.hbm %s2810_s2, %s1514_s24 }
  0xbe   : > { %s381_s4 = scalar_lea.vmem [#allocation8], %s1513_s25  ;;  %s2339_s8 = scalar_lea.hbm %s2811_s3, %s1514_s24 }
  0xbf   : > { %1572 = dma.hbm_to_vmem [thread:$0]  (!%p2866_p6), %s2295_s30, 384, %s2300_s28, %s340_s20  }
  0xc0   : > { %s389_s23 = sshll.u32 %s381_s4, 4  ;;  %s1827_s30 = scalar_lea.hbm %s2330_s21, 192  ;;  %s390_s23 = int_to_ptr.vmem [resolvable:$true] %s389_s23 }
  0xc1   : > { %p1828_p2 = scmp.ne.s32.totalorder %s2330_s21, %s1827_s30  ;;  %s1832_s27 = scalar_lea.hbm %s2810_s2, 384 }
  0xc2   : > { %p1833_p4 = scmp.lt.u32.totalorder %s2330_s21, %s2810_s2  ;;  %p1834_p8 = scmp.lt.u32.totalorder %s1832_s27, %s1827_s30 }
  0xc3   : > { %p1830_p0 = pnand %p1828_p2, %p2865_p13  ;;  %p1836_p7 = scmp.lt.u32.totalorder %s1827_s30, %s2330_s21 }
  0xc4   : > { %p1835_p3 = por %p1834_p8, %p1833_p4 }
  0xc5   : > { %p1831_p1 = pneg %p1830_p0 }
  0xc6   : > { %p1837_p9 = por %p1836_p7, %p1835_p3 }
  0xc8   : > { %p1838_p12 = pnand %p1837_p9, %p1831_p1 }
  0xca   : > { %1841 = shalt.err (!%p1838_p12)
}
  0xcb   : > { %s1842_s24 = scalar_lea.vmem %s390_s23, 192  ;;  %s2013_s1 = smov [#allocation8]  }
  0xcc   : > { %p1843_p5 = scmp.ne.s32.totalorder %s390_s23, %s1842_s24  ;;  %s1847_s4 = sshll.u32 %s2013_s1, 4  ;;  %s1848_s4 = int_to_ptr.vmem [resolvable:$false] %s1847_s4 }
  0xcd   : > { %s1849_s14 = scalar_lea.vmem %s1848_s4, 384  ;;  %p1850_p2 = scmp.lt.s32.totalorder %s390_s23, %s1848_s4 }
  0xce   : > { %p1845_p11 = pnand %p1843_p5, %p2865_p13  ;;  %p1851_p0 = scmp.lt.s32.totalorder %s1849_s14, %s1842_s24 }
  0xd0   : > { %p1846_p10 = pneg %p1845_p11  ;;  %p1852_p6 = por %p1851_p0, %p1850_p2 }
  0xd2   : > { %p1853_p4 = pnand %p1852_p6, %p1846_p10 }
  0xd4   : > { %1856 = shalt.err (!%p1853_p4)
}
  0xd5   : > { %p2867_p8 = scmp.ne.s32.totalorder %s2858_s19, 0  ;;  %s400_s26 = scalar_lea.vmem [#allocation9], %s1513_s25 }
  0xd6   : > { %s408_s30 = sshll.u32 %s400_s26, 4  ;;  %s2868_s28 = sand.u32 1, %s2005_s12   ;;  %s409_s30 = int_to_ptr.vmem [resolvable:$true] %s408_s30 }
  0xd7   : > { %1578 = dma.hbm_to_vmem [thread:$0]  (!%p2867_p8), %s2330_s21, 192, %s390_s23, %s2224_s5  }
  0xd8   : > { %s397_s20 = scalar_lea.sflag [#allocation10], %s2868_s28  ;;  %s1857_s27 = scalar_lea.hbm %s2339_s8, 192 }
  0xd9   : > { %p1858_p6 = scmp.ne.s32.totalorder %s2339_s8, %s1857_s27  ;;  %s1862_s24 = scalar_lea.hbm %s2811_s3, 384 }
  0xda   : > { %p1863_p7 = scmp.lt.u32.totalorder %s2339_s8, %s2811_s3  ;;  %p1864_p9 = scmp.lt.u32.totalorder %s1862_s24, %s1857_s27 }
  0xdb   : > { %p1860_p1 = pnand %p1858_p6, %p2865_p13  ;;  %p1866_p5 = scmp.lt.u32.totalorder %s1857_s27, %s2339_s8 }
  0xdc   : > { %p1865_p12 = por %p1864_p9, %p1863_p7 }
  0xdd   : > { %p1861_p3 = pneg %p1860_p1 }
  0xde   : > { %p1867_p11 = por %p1866_p5, %p1865_p12 }
  0xe0   : > { %p1868_p10 = pnand %p1867_p11, %p1861_p3 }
  0xe2   : > { %1871 = shalt.err (!%p1868_p10)
}
  0xe3   : > { %s1872_s5 = scalar_lea.vmem %s409_s30, 192  ;;  %s2014_s18 = smov [#allocation9]  }
  0xe4   : > { %p1873_p2 = scmp.ne.s32.totalorder %s409_s30, %s1872_s5  ;;  %s1877_s25 = sshll.u32 %s2014_s18, 4  ;;  %s1878_s25 = int_to_ptr.vmem [resolvable:$false] %s1877_s25 }
  0xe5   : > { %s1879_s21 = scalar_lea.vmem %s1878_s25, 384  ;;  %p1880_p6 = scmp.lt.s32.totalorder %s409_s30, %s1878_s25 }
  0xe6   : > { %p1875_p0 = pnand %p1873_p2, %p2865_p13  ;;  %p1881_p1 = scmp.lt.s32.totalorder %s1879_s21, %s1872_s5 }
  0xe8   : > { %p1876_p4 = pneg %p1875_p0  ;;  %p1882_p8 = por %p1881_p1, %p1880_p6 }
  0xea   : > { %p1883_p7 = pnand %p1882_p8, %p1876_p4 }
  0xec   : > { %1886 = shalt.err (!%p1883_p7)
}
  0xed   : > { %p2869_p9 = scmp.ne.s32.totalorder %s2858_s19, 0  ;;  %p2870_p3 = scmp.ne.s32.totalorder %s2848_s17, 0 }
  0xee   : > { %s2383_s16 = sand.u32 (!%p2870_p3), 1, %s1997_s10   ;;  %p2871_p13 = scmp.ne.s32.totalorder (!%p2870_p3), %s2845_s15, 0 }
  0xef   : > { %1581 = dma.hbm_to_vmem [thread:$0]  (!%p2869_p9), %s2339_s8, 192, %s409_s30, %s397_s20  }
  0xf0   : > { %417 = sbr.rel (%p2870_p3) target bundleno = 1012 (0x3f4), region = 52  ;;  %s420_s14 = scalar_lea.sflag (!%p2870_p3), [#allocation4], %s2383_s16 }
  0xf1   : > { %s2386_s23 = smul.u32 (!%p2870_p3), 24, %s2383_s16 }
  0xf3   : > { %s2390_s26 = scalar_lea.vmem (!%p2870_p3), [#allocation3], %s2386_s23 }
  0xf7   : > { %1960 = dma.done.wait (%p2871_p13), %s420_s14, 384  }
  0xf8   : > { %1962 = vsyncadd (%p2871_p13), %s420_s14, 4294966912  ;;  %s428_s17 = sand.u32 1, %s2098_s13   ;;  %s2398_s8 = scalar_lea.vmem [#allocation6], %s2386_s23 }
  0xf9   : > { %s429_s19 = scalar_lea.sflag [#allocation7], %s428_s17 }
  0xfa   : > { %1964 = dma.done.wait (%p2871_p13), %s429_s19, 576  }
  0xfb   : > { %1966 = vsyncadd (%p2871_p13), %s429_s19, 4294966720  ;;  %s1518_s30 = smul.u32 12, %s2383_s16  ;;  %s447_s20 = scalar_lea.sflag [#allocation10], %s428_s17 }
  0xfd   : > { %s441_s28 = scalar_lea.vmem [#allocation8], %s1518_s30  ;;  %s450_s27 = scalar_lea.vmem [#allocation9], %s1518_s30 }
  0xfe   : > { %1968 = dma.done.wait (%p2871_p13), %s447_s20, 192  }
  0xff   : > { %1970 = vsyncadd (%p2871_p13), %s447_s20, 4294967104  ;;  %p2872_p8 = scmp.eq.s32.totalorder %s2098_s13, 0 }
 0x101   : > { %1972 = dma.done.wait (%p2872_p8), [#allocation10], 128   ;;  %p2873_p12 = pmov %p2872_p8 }
 0x102   : > { %p2874_p5 = pmov %p2872_p8 }
 0x103   : > { %1974 = vsyncadd (%p2873_p12), [#allocation10], 4294967168 }
 0x104   : > { %1976 = dma.done.wait (%p2874_p5), [#allocation13], 768   ;;  %p2875_p11 = pmov %p2874_p5 }
 0x105   : > { %p2876_p10 = pmov %p2874_p5 }
 0x106   : > { %1978 = vsyncadd (%p2875_p11), [#allocation13], 4294966528 }
 0x107   : > { %1980 = dma.done.wait (%p2876_p10), [#allocation16], 48   ;;  %p2877_p2 = pmov %p2874_p5 }
 0x108   : > { %v2421_v0 = vld [vmem:[%s441_s28 + $0x8] sm:$0xf]  ;;  %v534_v1 = vld [vmem:[%s2390_s26 + $0x10] sm:$0xff]  ;;  %v540_v11 = vld [vmem:[%s2398_s8 + $0x10] sm:$0xff]  ;;  %vm591_vm0 = vcmask 125952   ;;  %s2015_s15 = smov 126  }
 0x109   : > { %1982 = vsyncadd (%p2877_p2), [#allocation16], 4294967248  ;;  %v522_v2 = vld [vmem:[%s441_s28] sm:$0xff]  ;;  %v526_v3 = vunpack.c.l.bf16 %v2421_v0  ;;  %v533_v5 = vld [vmem:[%s2390_s26 + $0x8] sm:$0xff]  ;;  %s2016_s22 = smov 127   ;;  %vm607_vm1 = vcmask 130052  }
 0x10a   : > { %v2425_v4 = vunpack.c.h.bf16 %v522_v2  ;;  %v527_v6 = vld [vmem:[%s450_s27] sm:$0xff]  ;;  %v2429_v8 = vunpack.c.l.bf16 %v522_v2  ;;  %v2433_v10 = vld [vmem:[%s450_s27 + $0x8] sm:$0xf]  ;;  %v2017_v29 = vmov 0   ;;  %s2018_s11 = smov 111   ;;  %s2019_s24 = smov 110  }
 0x10b   : > { %v539_v7 = vld [vmem:[%s2398_s8 + $0x8] sm:$0xff]  ;;  %v2431_v9 = vunpack.c.h.bf16 %v527_v6  ;;  %v532_v12 = vld [vmem:[%s2390_s26] sm:$0xff]  ;;  %v2437_v13 = vunpack.c.l.bf16 %v527_v6  ;;  %v537_v14 = vmul.f32 %v534_v1, %v526_v3  ;;  %v531_v16 = vunpack.c.l.bf16 %v2433_v10  ;;  %v538_v17 = vld [vmem:[%s2398_s8] sm:$0xff]  ;;  %1049 = vmatprep.subr.bf16.mxu1 %v2017_v29  ;;  %s2020_s1 = smov 109   ;;  %s2021_s4 = smov 94  }
 0x10c   : > { %v536_v15 = vmul.f32 %v533_v5, %v2425_v4  ;;  %v535_v19 = vmul.f32 %v532_v12, %v2429_v8  ;;  %vm556_vm2 = vcmask 424960   ;;  %v550_v38 = vrot.slane %v2425_v4, 4  ;;  %s2022_s5 = smov 93   ;;  %v2567_v63 = vld [vmem:[#allocation11] sm:$0xff]  ;;  %s2023_s18 = smov 92  }
 0x10d   : > { %v542_v18 = vmul.f32 %v539_v7, %v2431_v9  ;;  %v541_v20 = vmul.f32 %v538_v17, %v2437_v13  ;;  %v2447_v21 = vpack.c.bf16 %v537_v14, %v537_v14  ;;  %v543_v23 = vmul.f32 %v540_v11, %v531_v16  ;;  %s1519_s25 = smul.u32 3, %s2383_s16  ;;  %s1251_s30 = scalar_lea.sflag [#allocation19], %s2383_s16 }
 0x10e   : > { %v2449_v22 = vpack.c.bf16 %v536_v15, %v536_v15  ;;  %v2453_v25 = vpack.c.bf16 %v535_v19, %v535_v19  ;;  %v557_v35 = vsel %vm556_vm2, %v526_v3, 0.0  ;;  %v576_v37 = vsel %vm556_vm2, %v531_v16, 0.0  ;;  %s1527_s14 = smul.u32 48, %s2098_s13  ;;  %p2878_p4 = scmp.ne.s32.totalorder %s2857_s29, 0 }
 0x10f   : > { %v594_v24 = vpack.c.bf16 %v542_v18, %v542_v18  ;;  %666 = vrot.lane.b32.xlu1 %v2447_v21, %s2015_s15  ;;  %v595_v26 = vpack.c.bf16 %v543_v23, %v543_v23  ;;  %v593_v27 = vpack.c.bf16 %v541_v20, %v541_v20  ;;  %592 = vst.msk [vmem:[#allocation2 + $0x10] sm:$0xf] %vm591_vm0, %v2447_v21  ;;  %v558_v36 = vrot.slane %v557_v35, 4  ;;  %s2716_s21 = scalar_lea.vmem [#allocation18], %s1519_s25  ;;  %s2025_s20 = smov [#allocation18]  }
 0x110   : > { %617 = vrot.lane.b32.xlu0 %v2449_v22, %s2016_s22  ;;  %590 = vst [vmem:[#allocation2 + $0x8] sm:$0xf] %v2449_v22  ;;  %589 = vst [vmem:[#allocation2] sm:$0xf] %v2453_v25  ;;  %v570_v39 = vrot.slane %v2431_v9, 4  ;;  %v544_v40 = vrot.slane %v2429_v8, 4  ;;  %v551_v44 = vadd.f32 %v550_v38, %v2425_v4  ;;  %v1502_v2 = vcombine.high %v2567_v63, %v2567_v63  ;;  %s2734_s19 = scalar_lea.hbm %s2817_s9, %s1527_s14 }
 0x111   : > { %v2462_v28 = vrot.slane %v594_v24, 4  ;;  %v2466_v30 = vrot.slane %v595_v26, 4  ;;  %v2468_v31 = vrot.slane %v593_v27, 4  ;;  %v564_v41 = vrot.slane %v2437_v13, 4  ;;  %s1279_s8 = sshll.u32 %s2716_s21, 4  ;;  %s1891_s27 = sshll.u32 %s2025_s20, 4  ;;  %s1280_s8 = int_to_ptr.vmem [resolvable:$true] %s1279_s8  ;;  %s1892_s27 = int_to_ptr.vmem [resolvable:$false] %s1891_s27 }
 0x112   : > { %v577_v42 = vrot.slane %v576_v37, 4  ;;  %v559_v43 = vadd.f32 %v558_v36, %v557_v35  ;;  %v571_v45 = vadd.f32 %v570_v39, %v2431_v9  ;;  %v545_v46 = vadd.f32 %v544_v40, %v2429_v8  ;;  %s1887_s28 = scalar_lea.vmem %s1280_s8, 48  ;;  %p1894_p7 = scmp.lt.s32.totalorder %s1280_s8, %s1892_s27 }
 0x113   : > { %606 = vst [vmem:[#allocation2 + $0x8] sm:$0xf0] %v2462_v28  ;;  %632 = vrot.lane.b32.xlu1 %v2462_v28, %s2016_s22  ;;  %605 = vst [vmem:[#allocation2] sm:$0xf0] %v2468_v31  ;;  %v565_v47 = vadd.f32 %v564_v41, %v2437_v13  ;;  %v552_v49 = vrot.slane %v551_v44, 2  ;;  %vm1004_vm3 = vcmask 130048   ;;  %p1888_p0 = scmp.ne.s32.totalorder %s1280_s8, %s1887_s28 }
 0x114   : > { %619 = vrot.lane.b32.xlu0 %v2447_v21, %s2016_s22  ;;  %608 = vst.msk [vmem:[#allocation2 + $0x10] sm:$0xf0] %vm607_vm1, %v2466_v30  ;;  %v578_v48 = vadd.f32 %v577_v42, %v576_v37  ;;  %v572_v50 = vrot.slane %v571_v45, 2  ;;  %v546_v51 = vrot.slane %v545_v46, 2  ;;  %v560_v53 = vrot.slane %v559_v43, 2  ;;  %1504 = vmatprep.mubr.msk.bf16.mxu1 %vm1004_vm3, %v1502_v2 }
 0x115   : > { %v566_v52 = vrot.slane %v565_v47, 2  ;;  %v553_v56 = vadd.f32 %v552_v49, %v551_v44  ;;  %1503 = vmatprep.mubr.msk.bf16.mxu0 %vm1004_vm3, %v1502_v2  ;;  %vm621_vm4 = vcmask 1039360   ;;  %vm668_vm5 = vcmask 1031168   ;;  %p1889_p6 = pnand %p1888_p0, %p2878_p4 }
 0x116   : > { %v579_v54 = vrot.slane %v578_v48, 2  ;;  %v561_v55 = vadd.f32 %v560_v53, %v559_v43  ;;  %v573_v58 = vadd.f32 %v572_v50, %v571_v45  ;;  %v547_v59 = vadd.f32 %v546_v51, %v545_v46 }
 0x117   : > { %634 = vrot.lane.b32.xlu1 %v2466_v30, %s2016_s22  ;;  %v567_v60 = vadd.f32 %v566_v52, %v565_v47  ;;  %v554_v1 = vrot.slane %v553_v56, 1  ;;  %vm712_vm6 = vcmask 908288   ;;  %vm756_vm7 = vcmask 900096   ;;  %p1890_p1 = pneg %p1889_p6 }
 0x118   : > { %615 = vrot.lane.b32.xlu0 %v2453_v25, %s2016_s22  ;;  %v580_v57 = vadd.f32 %v579_v54, %v578_v48  ;;  %v562_v61 = vrot.slane %v561_v55, 1  ;;  %v574_v4 = vrot.slane %v573_v58, 1  ;;  %v548_v5 = vrot.slane %v547_v59, 1 }
 0x119   : > { %v568_v6 = vrot.slane %v567_v60, 1  ;;  %v555_v8 = vadd.f32 %v554_v1, %v553_v56  ;;  %vm800_vm8 = vcmask 891904   ;;  %vm844_vm9 = vcmask 769024  }
 0x11a   : > { %v972_v32 = vld [vmem:[#allocation2 + $0x8] sm:$0xff]  ;;  %v971_v34 = vld [vmem:[#allocation2] sm:$0xff]  ;;  %v581_v62 = vrot.slane %v580_v57, 1  ;;  %v563_v0 = vadd.f32 %v562_v61, %v561_v55  ;;  %v575_v9 = vadd.f32 %v574_v4, %v573_v58  ;;  %v549_v10 = vadd.f32 %v548_v5, %v547_v59 }
 0x11b   : > { %v973_v33 = vld [vmem:[#allocation2 + $0x10] sm:$0xff]  ;;  %1008 = vmatprep.subr.bf16.mxu0 %v972_v32  ;;  %630 = vrot.lane.b32.xlu1 %v2468_v31, %s2016_s22  ;;  %v569_v11 = vadd.f32 %v568_v6, %v567_v60  ;;  %vm888_vm10 = vcmask 760832   ;;  %vm932_vm11 = vcmask 752640  }
 0x11c   : > { %664 = vrot.lane.b32.xlu0 %v2449_v22, %s2015_s15  ;;  %1050 = vmatpush1.bf16.msra.mxu1 %v973_v33  ;;  %v582_v3 = vadd.f32 %v581_v62, %v580_v57  ;;  %v2587_v12 = vadd.f32 %v575_v9, %v555_v8 }
 0x11d   : > { %1009 = vmatpush1.bf16.msra.mxu0 %v971_v34  ;;  %1051 = vmatprep.subr.bf16.mxu1 %v2017_v29  ;;  %v2589_v13 = vadd.f32 %v569_v11, %v549_v10 }
 0x11e   : > { %v2576_v7 = vadd.f32 %v582_v3, %v563_v0 }
 0x11f   : > { %681 = vrot.lane.b32.xlu1 %v2466_v30, %s2015_s15 }
 0x120   : > { %679 = vrot.lane.b32.xlu0 %v2462_v28, %s2015_s15 }
 0x123   : > { %677 = vrot.lane.b32.xlu1 %v2468_v31, %s2015_s15 }
 0x124   : > { %662 = vrot.lane.b32.xlu0 %v2453_v25, %s2015_s15 }
 0x127   : > { %710 = vrot.lane.b32.xlu1 %v2447_v21, %s2018_s11 }
 0x128   : > { %708 = vrot.lane.b32.xlu0 %v2449_v22, %s2018_s11 }
 0x12b   : > { %725 = vrot.lane.b32.xlu1 %v2466_v30, %s2018_s11 }
 0x12c   : > { %723 = vrot.lane.b32.xlu0 %v2462_v28, %s2018_s11 }
 0x12f   : > { %721 = vrot.lane.b32.xlu1 %v2468_v31, %s2018_s11 }
 0x130   : > { %706 = vrot.lane.b32.xlu0 %v2453_v25, %s2018_s11 }
 0x133   : > { %754 = vrot.lane.b32.xlu1 %v2447_v21, %s2019_s24 }
 0x134   : > { %752 = vrot.lane.b32.xlu0 %v2449_v22, %s2019_s24 }
 0x137   : > { %769 = vrot.lane.b32.xlu1 %v2466_v30, %s2019_s24 }
 0x138   : > { %767 = vrot.lane.b32.xlu0 %v2462_v28, %s2019_s24 }
 0x13b   : > { %765 = vrot.lane.b32.xlu1 %v2468_v31, %s2019_s24 }
 0x13c   : > { %750 = vrot.lane.b32.xlu0 %v2453_v25, %s2019_s24 }
 0x13f   : > { %798 = vrot.lane.b32.xlu1 %v2447_v21, %s2020_s1 }
 0x140   : > { %796 = vrot.lane.b32.xlu0 %v2449_v22, %s2020_s1 }
 0x143   : > { %813 = vrot.lane.b32.xlu1 %v2466_v30, %s2020_s1 }
 0x144   : > { %811 = vrot.lane.b32.xlu0 %v2462_v28, %s2020_s1 }
 0x147   : > { %809 = vrot.lane.b32.xlu1 %v2468_v31, %s2020_s1 }
 0x148   : > { %794 = vrot.lane.b32.xlu0 %v2453_v25, %s2020_s1 }
 0x14b   : > { %842 = vrot.lane.b32.xlu1 %v2447_v21, %s2021_s4 }
 0x14c   : > { %840 = vrot.lane.b32.xlu0 %v2449_v22, %s2021_s4 }
 0x14f   : > { %857 = vrot.lane.b32.xlu1 %v2466_v30, %s2021_s4 }
 0x150   : > { %855 = vrot.lane.b32.xlu0 %v2462_v28, %s2021_s4 }
 0x153   : > { %853 = vrot.lane.b32.xlu1 %v2468_v31, %s2021_s4 }
 0x154   : > { %838 = vrot.lane.b32.xlu0 %v2453_v25, %s2021_s4 }
 0x157   : > { %886 = vrot.lane.b32.xlu1 %v2447_v21, %s2022_s5 }
 0x158   : > { %884 = vrot.lane.b32.xlu0 %v2449_v22, %s2022_s5 }
 0x15b   : > { %901 = vrot.lane.b32.xlu1 %v2466_v30, %s2022_s5 }
 0x15c   : > { %899 = vrot.lane.b32.xlu0 %v2462_v28, %s2022_s5 }
 0x15f   : > { %897 = vrot.lane.b32.xlu1 %v2468_v31, %s2022_s5 }
 0x160   : > { %882 = vrot.lane.b32.xlu0 %v2453_v25, %s2022_s5 }
 0x163   : > { %930 = vrot.lane.b32.xlu1 %v2447_v21, %s2023_s18 }
 0x164   : > { %928 = vrot.lane.b32.xlu0 %v2449_v22, %s2023_s18 }
 0x167   : > { %945 = vrot.lane.b32.xlu1 %v2466_v30, %s2023_s18 }
 0x168   : > { %943 = vrot.lane.b32.xlu0 %v2462_v28, %s2023_s18 }
 0x16b   : > { %941 = vrot.lane.b32.xlu1 %v2468_v31, %s2023_s18 }
 0x16c   : > { %926 = vrot.lane.b32.xlu0 %v2453_v25, %s2023_s18 }
 0x16f   : > { %649 = vrot.lane.b32.xlu1 %v2587_v12, %s2016_s22 }
 0x170   : > { %647 = vrot.lane.b32.xlu0 %v2589_v13, %s2016_s22 }
 0x173   : > { %691 = vrot.lane.b32.xlu1 %v2589_v13, %s2015_s15 }
 0x174   : > { %651 = vrot.lane.b32.xlu0 %v2576_v7, %s2016_s22 }
 0x177   : > { %695 = vrot.lane.b32.xlu1 %v2576_v7, %s2015_s15 }
 0x178   : > { %693 = vrot.lane.b32.xlu0 %v2587_v12, %s2015_s15  ;;  %s1893_s15 = scalar_lea.vmem %s1892_s27, 96 }
 0x179   : > { %p1895_p9 = scmp.lt.s32.totalorder %s1893_s15, %s1887_s28 }
 0x17b   : > { %737 = vrot.lane.b32.xlu1 %v2587_v12, %s2018_s11  ;;  %p1896_p3 = por %p1895_p9, %p1894_p7 }
 0x17c   : > { %735 = vrot.lane.b32.xlu0 %v2589_v13, %s2018_s11 }
 0x17d   : > { %p1897_p13 = pnand %p1896_p3, %p1890_p1 }
 0x17f   : > { %779 = vrot.lane.b32.xlu1 %v2589_v13, %s2019_s24 }
 0x180   : > { %739 = vrot.lane.b32.xlu0 %v2576_v7, %s2018_s11 }
 0x181   : > { %v667_v14 = vpop.permute.xlu1 %666 }
 0x182   : > { %v618_v15 = vpop.permute.xlu0 %617  ;;  %676 = vst.msk [vmem:[#allocation2 + $0x40] sm:$0xf] %vm591_vm0, %v667_v14 }
 0x183   : > { %783 = vrot.lane.b32.xlu1 %v2576_v7, %s2019_s24 }
 0x184   : > { %781 = vrot.lane.b32.xlu0 %v2587_v12, %s2019_s24 }
 0x185   : > { %v633_v16 = vpop.permute.xlu1 %632 }
 0x186   : > { %v620_v17 = vpop.permute.xlu0 %619 }
 0x187   : > { %v623_v18 = vsel %vm621_vm4, %v618_v15, %v620_v17  ;;  %629 = vst.msk [vmem:[#allocation2 + $0x28] sm:$0xf] %vm591_vm0, %v620_v17  ;;  %825 = vrot.lane.b32.xlu1 %v2587_v12, %s2020_s1 }
 0x188   : > { %628 = vst [vmem:[#allocation2 + $0x20] sm:$0xf] %v623_v18  ;;  %823 = vrot.lane.b32.xlu0 %v2589_v13, %s2020_s1 }
 0x189   : > { %v635_v19 = vpop.permute.xlu1 %634 }
 0x18a   : > { %v616_v20 = vpop.permute.xlu0 %615  ;;  %v637_v21 = vsel %vm621_vm4, %v633_v16, %v635_v19  ;;  %643 = vst.msk [vmem:[#allocation2 + $0x28] sm:$0xf0] %vm607_vm1, %v635_v19 }
 0x18b   : > { %v622_v22 = vsel %vm621_vm4, %v616_v20, %v618_v15  ;;  %642 = vst [vmem:[#allocation2 + $0x20] sm:$0xf0] %v637_v21  ;;  %867 = vrot.lane.b32.xlu1 %v2589_v13, %s2021_s4 }
 0x18c   : > { %627 = vst [vmem:[#allocation2 + $0x18] sm:$0xf] %v622_v22  ;;  %827 = vrot.lane.b32.xlu0 %v2576_v7, %s2020_s1 }
 0x18d   : > { %v631_v23 = vpop.permute.xlu1 %630 }
 0x18e   : > { %v665_v24 = vpop.permute.xlu0 %664  ;;  %v636_v25 = vsel %vm621_vm4, %v631_v23, %v633_v16 }
 0x18f   : > { %v670_v26 = vsel %vm668_vm5, %v665_v24, %v667_v14  ;;  %641 = vst [vmem:[#allocation2 + $0x18] sm:$0xf0] %v636_v25  ;;  %871 = vrot.lane.b32.xlu1 %v2576_v7, %s2021_s4 }
 0x190   : > { %675 = vst [vmem:[#allocation2 + $0x38] sm:$0xf] %v670_v26  ;;  %869 = vrot.lane.b32.xlu0 %v2587_v12, %s2021_s4 }
 0x191   : > { %v682_v27 = vpop.permute.xlu1 %681  ;;  %v976_v30 = vld [vmem:[#allocation2 + $0x28] sm:$0xff] }
 0x192   : > { %v680_v28 = vpop.permute.xlu0 %679  ;;  %690 = vst.msk [vmem:[#allocation2 + $0x40] sm:$0xf0] %vm607_vm1, %v682_v27  ;;  %1052 = vmatpush1.bf16.msra.mxu1 %v976_v30  ;;  %v975_v32 = vld [vmem:[#allocation2 + $0x20] sm:$0xff] }
 0x193   : > { %v684_v31 = vsel %vm668_vm5, %v680_v28, %v682_v27  ;;  %1010 = vmatprep.subr.bf16.mxu0 %v975_v32  ;;  %1053 = vmatprep.subr.bf16.mxu1 %v2017_v29 }
 0x194   : > { %689 = vst [vmem:[#allocation2 + $0x38] sm:$0xf0] %v684_v31  ;;  %913 = vrot.lane.b32.xlu1 %v2587_v12, %s2022_s5  ;;  %911 = vrot.lane.b32.xlu0 %v2589_v13, %s2022_s5 }
 0x195   : > { %v678_v33 = vpop.permute.xlu1 %677 }
 0x196   : > { %v663_v34 = vpop.permute.xlu0 %662  ;;  %v683_v35 = vsel %vm668_vm5, %v678_v33, %v680_v28  ;;  %v974_v37 = vld [vmem:[#allocation2 + $0x18] sm:$0xff] }
 0x197   : > { %v669_v36 = vsel %vm668_vm5, %v663_v34, %v665_v24  ;;  %688 = vst [vmem:[#allocation2 + $0x30] sm:$0xf0] %v683_v35  ;;  %1011 = vmatpush1.bf16.msra.mxu0 %v974_v37 }
 0x198   : > { %674 = vst [vmem:[#allocation2 + $0x30] sm:$0xf] %v669_v36  ;;  %955 = vrot.lane.b32.xlu1 %v2589_v13, %s2023_s18  ;;  %915 = vrot.lane.b32.xlu0 %v2576_v7, %s2022_s5 }
 0x199   : > { %v711_v38 = vpop.permute.xlu1 %710  ;;  %v979_v40 = vld [vmem:[#allocation2 + $0x40] sm:$0xff] }
 0x19a   : > { %v709_v39 = vpop.permute.xlu0 %708  ;;  %720 = vst.msk [vmem:[#allocation2 + $0x58] sm:$0xf] %vm591_vm0, %v711_v38  ;;  %1054 = vmatpush1.bf16.msra.mxu1 %v979_v40 }
 0x19b   : > { %v714_v41 = vsel %vm712_vm6, %v709_v39, %v711_v38  ;;  %v978_v42 = vld [vmem:[#allocation2 + $0x38] sm:$0xff]  ;;  %1055 = vmatprep.subr.bf16.mxu1 %v2017_v29 }
 0x19c   : > { %719 = vst [vmem:[#allocation2 + $0x50] sm:$0xf] %v714_v41  ;;  %1012 = vmatprep.subr.bf16.mxu0 %v978_v42  ;;  %959 = vrot.lane.b32.xlu1 %v2576_v7, %s2023_s18 }
 0x19d   : > { %957 = vrot.lane.b32.xlu0 %v2587_v12, %s2023_s18  ;;  %v726_v43 = vpop.permute.xlu1 %725 }
 0x19e   : > { %v724_v44 = vpop.permute.xlu0 %723  ;;  %734 = vst.msk [vmem:[#allocation2 + $0x58] sm:$0xf0] %vm607_vm1, %v726_v43 }
 0x19f   : > { %v728_v45 = vsel %vm712_vm6, %v724_v44, %v726_v43  ;;  %v977_v46 = vld [vmem:[#allocation2 + $0x30] sm:$0xff] }
 0x1a0   : > { %733 = vst [vmem:[#allocation2 + $0x50] sm:$0xf0] %v728_v45  ;;  %1013 = vmatpush1.bf16.msra.mxu0 %v977_v46 }
 0x1a1   : > { %v722_v47 = vpop.permute.xlu1 %721 }
 0x1a2   : > { %v707_v48 = vpop.permute.xlu0 %706  ;;  %v727_v49 = vsel %vm712_vm6, %v722_v47, %v724_v44 }
 0x1a3   : > { %v713_v50 = vsel %vm712_vm6, %v707_v48, %v709_v39  ;;  %732 = vst [vmem:[#allocation2 + $0x48] sm:$0xf0] %v727_v49 }
 0x1a4   : > { %718 = vst [vmem:[#allocation2 + $0x48] sm:$0xf] %v713_v50 }
 0x1a5   : > { %v755_v51 = vpop.permute.xlu1 %754  ;;  %v982_v53 = vld [vmem:[#allocation2 + $0x58] sm:$0xff] }
 0x1a6   : > { %v753_v52 = vpop.permute.xlu0 %752  ;;  %764 = vst.msk [vmem:[#allocation2 + $0x70] sm:$0xf] %vm591_vm0, %v755_v51  ;;  %1056 = vmatpush1.bf16.msra.mxu1 %v982_v53 }
 0x1a7   : > { %v758_v54 = vsel %vm756_vm7, %v753_v52, %v755_v51  ;;  %v981_v55 = vld [vmem:[#allocation2 + $0x50] sm:$0xff]  ;;  %1057 = vmatprep.subr.bf16.mxu1 %v2017_v29 }
 0x1a8   : > { %763 = vst [vmem:[#allocation2 + $0x68] sm:$0xf] %v758_v54  ;;  %1014 = vmatprep.subr.bf16.mxu0 %v981_v55 }
 0x1a9   : > { %v770_v56 = vpop.permute.xlu1 %769 }
 0x1aa   : > { %v768_v57 = vpop.permute.xlu0 %767  ;;  %778 = vst.msk [vmem:[#allocation2 + $0x70] sm:$0xf0] %vm607_vm1, %v770_v56 }
 0x1ab   : > { %v772_v58 = vsel %vm756_vm7, %v768_v57, %v770_v56  ;;  %v980_v59 = vld [vmem:[#allocation2 + $0x48] sm:$0xff] }
 0x1ac   : > { %777 = vst [vmem:[#allocation2 + $0x68] sm:$0xf0] %v772_v58  ;;  %1015 = vmatpush1.bf16.msra.mxu0 %v980_v59 }
 0x1ad   : > { %v766_v60 = vpop.permute.xlu1 %765 }
 0x1ae   : > { %v751_v61 = vpop.permute.xlu0 %750  ;;  %v771_v62 = vsel %vm756_vm7, %v766_v60, %v768_v57 }
 0x1af   : > { %v757_v0 = vsel %vm756_vm7, %v751_v61, %v753_v52  ;;  %776 = vst [vmem:[#allocation2 + $0x60] sm:$0xf0] %v771_v62 }
 0x1b0   : > { %762 = vst [vmem:[#allocation2 + $0x60] sm:$0xf] %v757_v0 }
 0x1b1   : > { %v799_v1 = vpop.permute.xlu1 %798  ;;  %v985_v3 = vld [vmem:[#allocation2 + $0x70] sm:$0xff] }
 0x1b2   : > { %v797_v2 = vpop.permute.xlu0 %796  ;;  %808 = vst.msk [vmem:[#allocation2 + $0x88] sm:$0xf] %vm591_vm0, %v799_v1  ;;  %1058 = vmatpush1.bf16.msra.mxu1 %v985_v3 }
 0x1b3   : > { %v802_v4 = vsel %vm800_vm8, %v797_v2, %v799_v1  ;;  %v984_v5 = vld [vmem:[#allocation2 + $0x68] sm:$0xff]  ;;  %1059 = vmatprep.subr.bf16.mxu1 %v2017_v29 }
 0x1b4   : > { %807 = vst [vmem:[#allocation2 + $0x80] sm:$0xf] %v802_v4  ;;  %1016 = vmatprep.subr.bf16.mxu0 %v984_v5 }
 0x1b5   : > { %v814_v6 = vpop.permute.xlu1 %813 }
 0x1b6   : > { %v812_v8 = vpop.permute.xlu0 %811  ;;  %822 = vst.msk [vmem:[#allocation2 + $0x88] sm:$0xf0] %vm607_vm1, %v814_v6 }
 0x1b7   : > { %v816_v9 = vsel %vm800_vm8, %v812_v8, %v814_v6  ;;  %v983_v10 = vld [vmem:[#allocation2 + $0x60] sm:$0xff] }
 0x1b8   : > { %821 = vst [vmem:[#allocation2 + $0x80] sm:$0xf0] %v816_v9  ;;  %1017 = vmatpush1.bf16.msra.mxu0 %v983_v10 }
 0x1b9   : > { %v810_v11 = vpop.permute.xlu1 %809 }
 0x1ba   : > { %v795_v14 = vpop.permute.xlu0 %794  ;;  %v815_v15 = vsel %vm800_vm8, %v810_v11, %v812_v8 }
 0x1bb   : > { %v801_v16 = vsel %vm800_vm8, %v795_v14, %v797_v2  ;;  %820 = vst [vmem:[#allocation2 + $0x78] sm:$0xf0] %v815_v15 }
 0x1bc   : > { %806 = vst [vmem:[#allocation2 + $0x78] sm:$0xf] %v801_v16 }
 0x1bd   : > { %v843_v17 = vpop.permute.xlu1 %842  ;;  %v988_v19 = vld [vmem:[#allocation2 + $0x88] sm:$0xff] }
 0x1be   : > { %v841_v18 = vpop.permute.xlu0 %840  ;;  %852 = vst.msk [vmem:[#allocation2 + $0xa0] sm:$0xf] %vm591_vm0, %v843_v17  ;;  %1060 = vmatpush1.bf16.msra.mxu1 %v988_v19 }
 0x1bf   : > { %v846_v20 = vsel %vm844_vm9, %v841_v18, %v843_v17  ;;  %v987_v21 = vld [vmem:[#allocation2 + $0x80] sm:$0xff]  ;;  %1061 = vmatprep.subr.bf16.mxu1 %v2017_v29 }
 0x1c0   : > { %851 = vst [vmem:[#allocation2 + $0x98] sm:$0xf] %v846_v20  ;;  %1018 = vmatprep.subr.bf16.mxu0 %v987_v21 }
 0x1c1   : > { %v858_v22 = vpop.permute.xlu1 %857 }
 0x1c2   : > { %v856_v23 = vpop.permute.xlu0 %855  ;;  %866 = vst.msk [vmem:[#allocation2 + $0xa0] sm:$0xf0] %vm607_vm1, %v858_v22 }
 0x1c3   : > { %v860_v24 = vsel %vm844_vm9, %v856_v23, %v858_v22  ;;  %v986_v25 = vld [vmem:[#allocation2 + $0x78] sm:$0xff] }
 0x1c4   : > { %865 = vst [vmem:[#allocation2 + $0x98] sm:$0xf0] %v860_v24  ;;  %1019 = vmatpush1.bf16.msra.mxu0 %v986_v25 }
 0x1c5   : > { %v854_v26 = vpop.permute.xlu1 %853 }
 0x1c6   : > { %v839_v27 = vpop.permute.xlu0 %838  ;;  %v859_v28 = vsel %vm844_vm9, %v854_v26, %v856_v23 }
 0x1c7   : > { %v845_v30 = vsel %vm844_vm9, %v839_v27, %v841_v18  ;;  %864 = vst [vmem:[#allocation2 + $0x90] sm:$0xf0] %v859_v28 }
 0x1c8   : > { %850 = vst [vmem:[#allocation2 + $0x90] sm:$0xf] %v845_v30 }
 0x1c9   : > { %v887_v31 = vpop.permute.xlu1 %886  ;;  %v991_v33 = vld [vmem:[#allocation2 + $0xa0] sm:$0xff] }
 0x1ca   : > { %v885_v32 = vpop.permute.xlu0 %884  ;;  %896 = vst.msk [vmem:[#allocation2 + $0xb8] sm:$0xf] %vm591_vm0, %v887_v31  ;;  %1062 = vmatpush1.bf16.msra.mxu1 %v991_v33 }
 0x1cb   : > { %v890_v34 = vsel %vm888_vm10, %v885_v32, %v887_v31  ;;  %v990_v35 = vld [vmem:[#allocation2 + $0x98] sm:$0xff]  ;;  %1063 = vmatprep.subr.bf16.mxu1 %v2017_v29 }
 0x1cc   : > { %895 = vst [vmem:[#allocation2 + $0xb0] sm:$0xf] %v890_v34  ;;  %1020 = vmatprep.subr.bf16.mxu0 %v990_v35 }
 0x1cd   : > { %v902_v36 = vpop.permute.xlu1 %901 }
 0x1ce   : > { %v900_v37 = vpop.permute.xlu0 %899  ;;  %910 = vst.msk [vmem:[#allocation2 + $0xb8] sm:$0xf0] %vm607_vm1, %v902_v36 }
 0x1cf   : > { %v904_v38 = vsel %vm888_vm10, %v900_v37, %v902_v36  ;;  %v989_v39 = vld [vmem:[#allocation2 + $0x90] sm:$0xff] }
 0x1d0   : > { %909 = vst [vmem:[#allocation2 + $0xb0] sm:$0xf0] %v904_v38  ;;  %1021 = vmatpush1.bf16.msra.mxu0 %v989_v39 }
 0x1d1   : > { %v898_v40 = vpop.permute.xlu1 %897 }
 0x1d2   : > { %v883_v41 = vpop.permute.xlu0 %882  ;;  %v903_v42 = vsel %vm888_vm10, %v898_v40, %v900_v37 }
 0x1d3   : > { %v889_v43 = vsel %vm888_vm10, %v883_v41, %v885_v32  ;;  %908 = vst [vmem:[#allocation2 + $0xa8] sm:$0xf0] %v903_v42 }
 0x1d4   : > { %894 = vst [vmem:[#allocation2 + $0xa8] sm:$0xf] %v889_v43 }
 0x1d5   : > { %v931_v44 = vpop.permute.xlu1 %930  ;;  %v994_v46 = vld [vmem:[#allocation2 + $0xb8] sm:$0xff] }
 0x1d6   : > { %v929_v45 = vpop.permute.xlu0 %928  ;;  %940 = vst.msk [vmem:[#allocation2 + $0xd0] sm:$0xf] %vm591_vm0, %v931_v44  ;;  %1064 = vmatpush1.bf16.msra.mxu1 %v994_v46 }
 0x1d7   : > { %v934_v47 = vsel %vm932_vm11, %v929_v45, %v931_v44  ;;  %v993_v48 = vld [vmem:[#allocation2 + $0xb0] sm:$0xff]  ;;  %1065 = vmatprep.subr.bf16.mxu1 %v2017_v29  ;;  %v1501_v29 = vcombine.low %v2567_v63, %v2567_v63 }
 0x1d8   : > { %939 = vst [vmem:[#allocation2 + $0xc8] sm:$0xf] %v934_v47  ;;  %1022 = vmatprep.subr.bf16.mxu0 %v993_v48  ;;  %v1107_v48 = vlaneseq }
 0x1d9   : > { %v946_v49 = vpop.permute.xlu1 %945 }
 0x1da   : > { %v944_v50 = vpop.permute.xlu0 %943  ;;  %954 = vst.msk [vmem:[#allocation2 + $0xd0] sm:$0xf0] %vm607_vm1, %v946_v49  ;;  %vm1242_vm12 = vcmp.lt.s32.totalorder %v1107_v48, 272 }
 0x1db   : > { %v948_v51 = vsel %vm932_vm11, %v944_v50, %v946_v49  ;;  %v992_v52 = vld [vmem:[#allocation2 + $0xa8] sm:$0xff]  ;;  %v2024_v49 = vmov 1966171168  }
 0x1dc   : > { %953 = vst [vmem:[#allocation2 + $0xc8] sm:$0xf0] %v948_v51  ;;  %1023 = vmatpush1.bf16.msra.mxu0 %v992_v52 }
 0x1dd   : > { %v942_v53 = vpop.permute.xlu1 %941 }
 0x1de   : > { %v927_v54 = vpop.permute.xlu0 %926  ;;  %v947_v55 = vsel %vm932_vm11, %v942_v53, %v944_v50  ;;  %v1218_v50 = vunpack.c.l.s4 %v2024_v49 }
 0x1df   : > { %v933_v56 = vsel %vm932_vm11, %v927_v54, %v929_v45  ;;  %952 = vst [vmem:[#allocation2 + $0xc0] sm:$0xf0] %v947_v55 }
 0x1e0   : > { %938 = vst [vmem:[#allocation2 + $0xc0] sm:$0xf] %v933_v56 }
 0x1e1   : > { %v997_v57 = vld [vmem:[#allocation2 + $0xd0] sm:$0xff]  ;;  %v650_v58 = vpop.permute.xlu1 %649 }
 0x1e2   : > { %v648_v59 = vpop.permute.xlu0 %647  ;;  %1066 = vmatpush1.bf16.msra.mxu1 %v997_v57  ;;  %v1108_v57 = vshrl.u32 %v1107_v48, 7 }
 0x1e3   : > { %v996_v60 = vld [vmem:[#allocation2 + $0xc8] sm:$0xff]  ;;  %v654_v5 = vsel %vm621_vm4, %v648_v59, %v650_v58 }
 0x1e4   : > { %1024 = vmatprep.subr.bf16.mxu0 %v996_v60  ;;  %v659_v10 = vadd.f32 %v654_v5, %v2589_v13 }
 0x1e5   : > { %1082 = vmatmul.mubr.bf16.vlgmr.msra.gmra.mrb[0].mxu1 %v1501_v29  ;;  %v692_v61 = vpop.permute.xlu1 %691 }
 0x1e6   : > { %v652_v62 = vpop.permute.xlu0 %651 }
 0x1e7   : > { %v995_v0 = vld [vmem:[#allocation2 + $0xc0] sm:$0xff]  ;;  %v655_v6 = vsel %vm621_vm4, %v650_v58, %v652_v62  ;;  %v661_v9 = vadd.f32 %v652_v62, %v2576_v7 }
 0x1e8   : > { %1025 = vmatpush1.bf16.msra.mxu0 %v995_v0  ;;  %v660_v11 = vadd.f32 %v655_v6, %v2587_v12 }
 0x1e9   : > { %v696_v1 = vpop.permute.xlu1 %695 }
 0x1ea   : > { %v694_v2 = vpop.permute.xlu0 %693  ;;  %v705_v18 = vadd.f32 %v696_v1, %v661_v9 }
 0x1eb   : > { %1041 = vmatmul.mubr.bf16.vlgmr.msra.gmra.mrb[0].mxu0 %v1501_v29  ;;  %v698_v14 = vsel %vm668_vm5, %v692_v61, %v694_v2  ;;  %v699_v15 = vsel %vm668_vm5, %v694_v2, %v696_v1  ;;  %v1219_v29 = vunpack.c.0.s8 %v1218_v50 }
 0x1ec   : > { %v703_v19 = vadd.f32 %v698_v14, %v659_v10  ;;  %v704_v20 = vadd.f32 %v699_v15, %v660_v11 }
 0x1ed   : > { %v738_v3 = vpop.permute.xlu1 %737  ;;  %v1222_v2 = vsub.s32 %v1219_v29, %v1108_v57 }
 0x1ee   : > { %v736_v4 = vpop.permute.xlu0 %735 }
 0x1ef   : > { %v742_v21 = vsel %vm712_vm6, %v736_v4, %v738_v3 }
 0x1f0   : > { %v747_v25 = vadd.f32 %v742_v21, %v703_v19 }
 0x1f1   : > { %v780_v63 = vpop.permute.xlu1 %779 }
 0x1f2   : > { %v740_v8 = vpop.permute.xlu0 %739 }
 0x1f3   : > { %v743_v22 = vsel %vm712_vm6, %v738_v3, %v740_v8  ;;  %v749_v7 = vadd.f32 %v740_v8, %v705_v18 }
 0x1f4   : > { %v748_v13 = vadd.f32 %v743_v22, %v704_v20 }
 0x1f5   : > { %v784_v16 = vpop.permute.xlu1 %783 }
 0x1f6   : > { %v782_v17 = vpop.permute.xlu0 %781  ;;  %v793_v30 = vadd.f32 %v784_v16, %v749_v7 }
 0x1f7   : > { %v786_v12 = vsel %vm756_vm7, %v780_v63, %v782_v17  ;;  %v787_v26 = vsel %vm756_vm7, %v782_v17, %v784_v16 }
 0x1f8   : > { %v791_v31 = vadd.f32 %v786_v12, %v747_v25  ;;  %v792_v32 = vadd.f32 %v787_v26, %v748_v13  ;;  %v1109_v12 = vsub.s32 0, %v1108_v57  ;;  %v1134_v26 = vsub.s32 2, %v1108_v57 }
 0x1f9   : > { %v826_v23 = vpop.permute.xlu1 %825 }
 0x1fa   : > { %v824_v24 = vpop.permute.xlu0 %823 }
 0x1fb   : > { %v830_v33 = vsel %vm800_vm8, %v824_v24, %v826_v23 }
 0x1fc   : > { %v835_v38 = vadd.f32 %v830_v33, %v791_v31  ;;  %v1130_v33 = vsub.s32 1, %v1108_v57 }
 0x1fd   : > { %v868_v27 = vpop.permute.xlu1 %867 }
 0x1fe   : > { %v828_v28 = vpop.permute.xlu0 %827 }
 0x1ff   : > { %v831_v34 = vsel %vm800_vm8, %v826_v23, %v828_v28  ;;  %v837_v37 = vadd.f32 %v828_v28, %v793_v30  ;;  %v1122_v28 = vld [vmem:[#allocation15] sm:$0x7] }
 0x200   : > { %v836_v39 = vadd.f32 %v831_v34, %v792_v32  ;;  %v1135_v34 = vrot.slane %v1122_v28, %v1134_v26 }
 0x201   : > { %v872_v35 = vpop.permute.xlu1 %871 }
 0x202   : > { %v870_v36 = vpop.permute.xlu0 %869  ;;  %v881_v44 = vadd.f32 %v872_v35, %v837_v37 }
 0x203   : > { %v874_v40 = vsel %vm844_vm9, %v868_v27, %v870_v36  ;;  %v875_v41 = vsel %vm844_vm9, %v870_v36, %v872_v35 }
 0x204   : > { %v879_v45 = vadd.f32 %v874_v40, %v835_v38  ;;  %v880_v46 = vadd.f32 %v875_v41, %v836_v39  ;;  %v1127_v38 = vrot.slane %v1122_v28, %v1109_v12  ;;  %v1131_v41 = vrot.slane %v1122_v28, %v1130_v33 }
 0x206   : > { %v914_v42 = vpop.permute.xlu1 %913  ;;  %v912_v43 = vpop.permute.xlu0 %911 }
 0x207   : > { %v918_v47 = vsel %vm888_vm10, %v912_v43, %v914_v42 }
 0x208   : > { %v923_v55 = vadd.f32 %v918_v47, %v879_v45 }
 0x20a   : > { %v956_v51 = vpop.permute.xlu1 %955  ;;  %v916_v52 = vpop.permute.xlu0 %915 }
 0x20b   : > { %v919_v53 = vsel %vm888_vm10, %v914_v42, %v916_v52  ;;  %v925_v54 = vadd.f32 %v916_v52, %v881_v44 }
 0x20c   : > { %v924_v56 = vadd.f32 %v919_v53, %v880_v46 }
 0x20e   : > { %v960_v58 = vpop.permute.xlu1 %959 }
 0x20f   : > { %v958_v59 = vpop.permute.xlu0 %957  ;;  %v969_v60 = vadd.f32 %v960_v58, %v925_v54 }
 0x210   : > { %v962_v61 = vsel %vm932_vm11, %v956_v51, %v958_v59  ;;  %v963_v62 = vsel %vm932_vm11, %v958_v59, %v960_v58 }
 0x211   : > { %v967_v0 = vadd.f32 %v962_v61, %v923_v55  ;;  %v968_v1 = vadd.f32 %v963_v62, %v924_v56  ;;  %v1091_v3 = vadd.f32 1e-08, %v969_v60  ;;  %v1100_v4 = vmax.f32 %v969_v60, 0.0 }
 0x213   : > { %v1089_v5 = vadd.f32 1e-08, %v967_v0  ;;  %v1090_v6 = vadd.f32 1e-08, %v968_v1  ;;  %v1098_v63 = vmax.f32 %v967_v0, 0.0  ;;  %v1099_v8 = vmax.f32 %v968_v1, 0.0 }
 0x214   : > { %1647 = vrcp.f32 %v1091_v3  ;;  %v1103_v9 = vmin.f32 %v1100_v4, 1.0 }
 0x215   : > { %1649 = vrcp.f32 %v1089_v5  ;;  %v1101_v10 = vmin.f32 %v1098_v63, 1.0  ;;  %v1102_v11 = vmin.f32 %v1099_v8, 1.0 }
 0x216   : > { %1651 = vrcp.f32 %v1090_v6  ;;  %v1230_v14 = vrot.slane %v1103_v9, %v1222_v2 }
 0x217   : > { %v1216_v15 = vcombine.low %v1101_v10, %v1102_v11 }
 0x219   : > { %v1223_v16 = vrot.slane %v1216_v15, %v1222_v2 }
 0x21b   : > { %v1231_v17 = vcombine.low %v1223_v16, %v1230_v14 }
 0x21d   : > { %v1238_v18 = vrot.slane %v1231_v17, %v1222_v2 }
 0x21e   : > { %v1648_v19 = vpop.eup %1647 }
 0x21f   : > { %v1650_v20 = vpop.eup %1649  ;;  %v1097_v21 = vmul.f32 144.0, %v1648_v19  ;;  %1244 = vst.msk [vmem:[%s2716_s21] sm:$0x7] %vm1242_vm12, %v1238_v18 }
 0x220   : > { %v1652_v22 = vpop.eup %1651  ;;  %v1095_v23 = vmul.f32 144.0, %v1650_v20 }
 0x221   : > { %v1106_v24 = vmul.f32 %v1103_v9, %v1097_v21  ;;  %v1096_v7 = vmul.f32 144.0, %v1652_v22 }
 0x222   : > { %v1104_v25 = vmul.f32 %v1101_v10, %v1095_v23 }
 0x223   : > { %v1105_v13 = vmul.f32 %v1102_v11, %v1096_v7  ;;  %v1118_v27 = vrot.slane %v1106_v24, %v1109_v12 }
 0x224   : > { %v1110_v37 = vrot.slane %v1104_v25, %v1109_v12 }
 0x225   : > { %v1114_v40 = vrot.slane %v1105_v13, %v1109_v12 }
 0x2b8   : > { %v1083_v30 = vpop.f32.mrb[0].mxu1 }
 0x2b9   : > { %v2719_v31 = vmul.f32 %v1118_v27, %v1083_v30  ;;  %v1085_v32 = vpop.f32.mrb[1].mxu1 }
 0x2ba   : > { %v1086_v35 = vpop.f32.mrb[2].mxu1 }
 0x2bb   : > { %v1087_v36 = vpop.f32.mrb[3].mxu1  ;;  %v1141_v42 = vmul.f32 %v1135_v34, %v2719_v31 }
 0x2bd   : > { %v1156_v51 = vmul.f32 %v1141_v42, %v1141_v42  ;;  %v1143_v54 = vsel %vm1004_vm3, %v1141_v42, 0.0 }
 0x2be   : > { %v1042_v39 = vpop.f32.mrb[0].mxu0 }
 0x2bf   : > { %v2722_v43 = vmul.f32 %v1110_v37, %v1042_v39  ;;  %v1044_v44 = vpop.f32.mrb[1].mxu0  ;;  %v1158_v57 = vsel %vm1004_vm3, %v1156_v51, 0.0 }
 0x2c0   : > { %v2724_v45 = vmul.f32 %v1114_v40, %v1044_v44  ;;  %v1046_v46 = vpop.f32.mrb[2].mxu0 }
 0x2c1   : > { %v1139_v47 = vmul.f32 %v1127_v38, %v2722_v43  ;;  %v1047_v48 = vpop.f32.mrb[3].mxu0 }
 0x2c2   : > { %v1140_v49 = vmul.f32 %v1131_v41, %v2724_v45 }
 0x2c3   : > { %v1154_v50 = vmul.f32 %v1139_v47, %v1139_v47 }
 0x2c4   : > { %v1155_v52 = vmul.f32 %v1140_v49, %v1140_v49  ;;  %v1142_v53 = vadd.f32 %v1140_v49, %v1139_v47 }
 0x2c6   : > { %v1144_v55 = vadd.f32 %v1143_v54, %v1142_v53  ;;  %v1157_v56 = vadd.f32 %v1155_v52, %v1154_v50 }
 0x2c8   : > { %1145 = vadd.xlane.f32.xlu0 %v1144_v55  ;;  %v1159_v29 = vadd.f32 %v1158_v57, %v1157_v56 }
 0x2ca   : > { %1160 = vadd.xlane.f32.xlu1 %v1159_v29 }
 0x355   : > { %v1146_v58 = vpop.xlane.xlu0 %1145 }
 0x356   : > { %v1147_v59 = vrot.slane %v1146_v58, 4 }
 0x357   : > { %v1161_v60 = vpop.xlane.xlu1 %1160 }
 0x358   : > { %v1148_v61 = vadd.f32 %v1147_v59, %v1146_v58  ;;  %v1162_v62 = vrot.slane %v1161_v60, 4 }
 0x35a   : > { %v1149_v0 = vrot.slane %v1148_v61, 2  ;;  %v1163_v1 = vadd.f32 %v1162_v62, %v1161_v60 }
 0x35c   : > { %v1164_v2 = vrot.slane %v1163_v1, 2  ;;  %v1150_v3 = vadd.f32 %v1149_v0, %v1148_v61 }
 0x35e   : > { %v1165_v4 = vadd.f32 %v1164_v2, %v1163_v1  ;;  %v1151_v5 = vrot.slane %v1150_v3, 1 }
 0x360   : > { %v1152_v6 = vadd.f32 %v1151_v5, %v1150_v3  ;;  %v1166_v63 = vrot.slane %v1165_v4, 1 }
 0x362   : > { %1520 = vpush %v1152_v6  ;;  %v1167_v8 = vadd.f32 %v1166_v63, %v1165_v4 }
 0x364   : > { %1522 = vpush %v1167_v8 }
 0x365   : > { %1900 = shalt.err (!%p1897_p13)
}
 0x366   : > { %s1901_s22 = scalar_lea.hbm %s2734_s19, 48  ;;  %s1905_s1 = scalar_lea.hbm %s2817_s9, 96 }
 0x367   : > { %p1902_p8 = scmp.ne.s32.totalorder %s2734_s19, %s1901_s22  ;;  %p1906_p11 = scmp.lt.u32.totalorder %s2734_s19, %s2817_s9 }
 0x368   : > { %p1907_p10 = scmp.lt.u32.totalorder %s1905_s1, %s1901_s22  ;;  %p1909_p0 = scmp.lt.u32.totalorder %s1901_s22, %s2734_s19 }
 0x369   : > { %p1903_p12 = pnand %p1902_p8, %p2878_p4 }
 0x36a   : > { %p1908_p2 = por %p1907_p10, %p1906_p11 }
 0x36b   : > { %p1904_p5 = pneg %p1903_p12 }
 0x36c   : > { %p1910_p6 = por %p1909_p0, %p1908_p2 }
 0x36e   : > { %p1911_p1 = pnand %p1910_p6, %p1904_p5 }
 0x370   : > { %1914 = shalt.err (!%p1911_p1)
}
 0x371   : > { %1553 = dma.vmem_to_hbm [thread:$0]  (%p2878_p4), %s1280_s8, 48, %s2734_s19, %s1251_s30   ;;  %v1189_v18 = vld [vmem:[#allocation12] sm:$0xff]  ;;  %v1190_v19 = vld [vmem:[#allocation12 + $0x8] sm:$0xff]  ;;  %v1191_v20 = vld [vmem:[#allocation12 + $0x10] sm:$0xff] }
 0x372   : > { %v1195_v24 = vld [vmem:[#allocation14] sm:$0xff]  ;;  %v1196_v7 = vld [vmem:[#allocation14 + $0x8] sm:$0xff]  ;;  %v1197_v25 = vld [vmem:[#allocation14 + $0x10] sm:$0xff]  ;;  %s1526_s19 = smul.u32 384, %s2098_s13  ;;  %s513_s8 = scalar_lea.vmem [#allocation17], %s2386_s23 }
 0x373   : > { %s1265_s30 = sshll.u32 %s513_s8, 4  ;;  %s2879_s22 = sld [smem:[#allocation36_spill]]  ;;  %s2765_s30 = int_to_ptr.vmem [resolvable:$true] %s1265_s30 }
 0x374   : > { %s1246_s13 = scalar_lea.sflag [#allocation5], %s2383_s16  ;;  %s1915_s23 = scalar_lea.vmem %s2765_s30, 384 }
 0x375   : > { %p1916_p7 = scmp.ne.s32.totalorder %s2765_s30, %s1915_s23  ;;  %s2026_s24 = smov [#allocation17]  }
 0x376   : > { %s1919_s1 = sshll.u32 %s2026_s24, 4  ;;  %s1920_s1 = int_to_ptr.vmem [resolvable:$false] %s1919_s1 }
 0x377   : > { %p1917_p9 = pnand %p1916_p7, %p2878_p4  ;;  %s1921_s4 = scalar_lea.vmem %s1920_s1, 768 }
 0x378   : > { %p1922_p13 = scmp.lt.s32.totalorder %s2765_s30, %s1920_s1  ;;  %p1923_p8 = scmp.lt.s32.totalorder %s1921_s4, %s1915_s23 }
 0x379   : > { %s2763_s11 = scalar_lea.hbm %s2879_s22, %s1526_s19  ;;  %p1918_p3 = pneg %p1917_p9 }
 0x37a   : > { %p1924_p12 = por %p1923_p8, %p1922_p13 }
 0x37c   : > { %p1925_p5 = pnand %p1924_p12, %p1918_p3 }
 0x393   : > { %s1521_s18 = spop %1520 }
 0x394   : > { %s1171_s25 = smul.f32 0.00048828125, %s1521_s18 }
 0x395   : > { %s1523_s21 = spop %1522 }
 0x396   : > { %s1175_s14 = smul.f32 %s1171_s25, %s1171_s25  ;;  %v1181_v11 = vstv %s1171_s25 }
 0x397   : > { %s1174_s26 = smul.f32 0.00048828125, %s1523_s21  ;;  %v1182_v14 = vsub.f32 %v2722_v43, %v1181_v11  ;;  %v1183_v15 = vsub.f32 %v2724_v45, %v1181_v11  ;;  %v1184_v16 = vsub.f32 %v2719_v31, %v1181_v11 }
 0x399   : > { %s1176_s17 = ssub.f32 %s1174_s26, %s1175_s14 }
 0x39b   : > { %s1177_s28 = sadd.f32 1e-05, %s1176_s17 }
 0x39d   : > { %v1178_v9 = vstv %s1177_s28 }
 0x39e   : > { %1653 = vrsqrt.f32 %v1178_v9 }
 0x3a8   : > { %v1654_v10 = vpop.eup %1653 }
 0x3a9   : > { %1524 = vpush %v1654_v10 }
 0x3da   : > { %s1525_s20 = spop %1524 }
 0x3db   : > { %v1185_v17 = vstv %s1525_s20 }
 0x3dc   : > { %v1186_v21 = vmul.f32 %v1185_v17, %v1182_v14  ;;  %v1187_v22 = vmul.f32 %v1185_v17, %v1183_v15  ;;  %v1188_v23 = vmul.f32 %v1185_v17, %v1184_v16 }
 0x3de   : > { %v1192_v13 = vmul.f32 %v1189_v18, %v1186_v21  ;;  %v1193_v12 = vmul.f32 %v1190_v19, %v1187_v22  ;;  %v1194_v26 = vmul.f32 %v1191_v20, %v1188_v23 }
 0x3e0   : > { %v1198_v27 = vadd.f32 %v1195_v24, %v1192_v13  ;;  %v1199_v28 = vadd.f32 %v1196_v7, %v1193_v12  ;;  %v1200_v30 = vadd.f32 %v1197_v25, %v1194_v26 }
 0x3e2   : > { %vm1201_vm13 = vcmp.gt.f32.partialorder %v1198_v27, 0.0  ;;  %vm1202_vm14 = vcmp.gt.f32.partialorder %v1199_v28, 0.0  ;;  %vm1203_vm15 = vcmp.gt.f32.partialorder %v1200_v30, 0.0  ;;  %v1204_v31 = vmul.f32 0.2, %v1198_v27 }
 0x3e3   : > { %v1205_v32 = vmul.f32 0.2, %v1199_v28  ;;  %v1206_v33 = vmul.f32 0.2, %v1200_v30 }
 0x3e4   : > { %v1207_v34 = vsel %vm1201_vm13, %v1198_v27, %v1204_v31 }
 0x3e5   : > { %v1208_v35 = vsel %vm1202_vm14, %v1199_v28, %v1205_v32  ;;  %v1209_v36 = vsel %vm1203_vm15, %v1200_v30, %v1206_v33  ;;  %1210 = vst [vmem:[%s513_s8] sm:$0xff] %v1207_v34 }
 0x3e6   : > { %1211 = vst [vmem:[%s513_s8 + $0x8] sm:$0xff] %v1208_v35  ;;  %1212 = vst.msk [vmem:[%s513_s8 + $0x10] sm:$0xff] %vm1004_vm3, %v1209_v36 }
 0x3e7   : > { %1928 = shalt.err (!%p1925_p5)
}
 0x3e8   : > { %s1929_s16 = scalar_lea.hbm %s2763_s11, 384  ;;  %s1933_s25 = scalar_lea.hbm %s2879_s22, 768 }
 0x3e9   : > { %p1930_p11 = scmp.ne.s32.totalorder %s2763_s11, %s1929_s16  ;;  %p1934_p0 = scmp.lt.u32.totalorder %s2763_s11, %s2879_s22 }
 0x3ea   : > { %p1935_p6 = scmp.lt.u32.totalorder %s1933_s25, %s1929_s16  ;;  %p1937_p7 = scmp.lt.u32.totalorder %s1929_s16, %s2763_s11 }
 0x3eb   : > { %p1931_p10 = pnand %p1930_p11, %p2878_p4 }
 0x3ec   : > { %p1936_p1 = por %p1935_p6, %p1934_p0 }
 0x3ed   : > { %p1932_p2 = pneg %p1931_p10 }
 0x3ee   : > { %p1938_p9 = por %p1937_p7, %p1936_p1 }
 0x3f0   : > { %p1939_p3 = pnand %p1938_p9, %p1932_p2 }
 0x3f2   : > { %1942 = shalt.err (!%p1939_p3)
}
 0x3f3   : > { %1552 = dma.vmem_to_hbm [thread:$0]  (%p2878_p4), %s2765_s30, 384, %s2763_s11, %s1246_s13  }
 0x3f4 PF: > { %s2880_s26 = sld [smem:[#allocation28_spill]]  ;;  %s2881_s17 = sld [smem:[#allocation30_spill]] }
 0x3f5   : > { %p2883_p8 = scmp.ge.s32.totalorder %s2005_s12, 2 }
 0x3fa   : > { %s1291_s28 = sand.u32 1, %s2880_s26   ;;  %p2882_p13 = scmp.ne.s32.totalorder %s2881_s17, 0 }
 0x3fb   : > { %s1292_s20 = scalar_lea.sflag [#allocation5], %s1291_s28 }
 0x3fc   : > { %p1583_p12 = pnand %p2883_p8, %p2882_p13 }
 0x3fe   : > { %1984 = dma.done.wait (!%p1583_p12), %s1292_s20, 384  }
 0x3ff   : > { %1986 = vsyncadd (!%p1583_p12), %s1292_s20, 4294966912  ;;  %s1301_s19 = scalar_lea.sflag [#allocation19], %s1291_s28 }
 0x400   : > { %1988 = dma.done.wait (!%p1583_p12), %s1301_s19, 48  }
 0x401   : > { %1990 = vsyncadd (!%p1583_p12), %s1301_s19, 4294967248  ;;  %s2884_s12 = sld [smem:[#allocation31_spill]]  ;;  %s2885_s29 = sld [smem:[#allocation29_spill]] }
 0x402   : > { %s2886_s11 = sld [smem:[#allocation32_spill]]  ;;  %s2887_s30 = smov %s1997_s10 }
 0x407   : > { %p34_p4 = scmp.ge.s32.totalorder %s2884_s12, 4   ;;  %s2888_s10 = smov %s2885_s29 }
 0x409   :  { %36 = sbr.rel (!%p34_p4) target bundleno = 18 (0x12), region = 167 }
 0x410   :  { %1306 = vsyncpa [#allocation4], 1 }
 0x411   :  { %1308 = vsyncpa [#allocation4 + $0x1], 1 }
 0x412   :  { %1309 = vsyncpa [#allocation7], 1 }
 0x413   :  { %1311 = vsyncpa [#allocation7 + $0x1], 1 }
 0x414   :  { %1312 = vsyncpa [#allocation10], 1 }
 0x415   :  { %1314 = vsyncpa [#allocation10 + $0x1], 1 }
 0x416   :  { %1315 = vsyncpa [#allocation13], 1 }
 0x417   :  { %1316 = vsyncpa [#allocation16], 1 }
 0x418   :  { %1317 = vsyncpa [#allocation5], 1 }
 0x419   :  { %1319 = vsyncpa [#allocation5 + $0x1], 1 }
 0x41a   :  { %1320 = vsyncpa [#allocation19], 1 }
 0x41b   :  { %1322 = vsyncpa [#allocation19 + $0x1], 1 }

</bundles_post_ra>
